<compile_context>
chip_gen: v7x
topology: tpu7x:2x2x1
jax: 0.10.0
libtpu: 0.0.40
codegen_flags: <defaults>
</compile_context>

<pallas_src>
import functools

import jax
import jax.numpy as jnp
from jax.experimental import pallas as pl
from jax.experimental.pallas import tpu as pltpu


def _round_up(v, m):
    return (v + m - 1) // m * m


def _pad2(a, rows, cols):
    return jnp.pad(a, ((0, rows - a.shape[0]), (0, cols - a.shape[1])))


# ---------------------------------------------------------------------------
# Fused Pallas kernel: input layer + L residual GCN layers + mean-pool + head.
# Grid = (num_layers, node_row_tiles, node_contraction_tiles), row-major order.
# ---------------------------------------------------------------------------
def _gtg_fused_kernel(hidden_dim, tile_n,
                      x_ref, a_ref, pool_ref,
                      w_in_ref, b_in_ref,
                      w_ref, b_ref, gamma_ref, beta_ref,
                      w_out_ref, b_out_ref,
                      out_ref,
                      h_scr, xw_scr, m_acc, pooled_acc):
    l = pl.program_id(0)
    i = pl.program_id(1)
    k = pl.program_id(2)
    nl = pl.num_programs(0)
    ni = pl.num_programs(1)
    nk = pl.num_programs(2)

    row_k = pl.multiple_of(k * tile_n, tile_n)
    row_i = pl.multiple_of(i * tile_n, tile_n)

    # ---- very first grid step: init the pooled accumulator and the resident
    #      output block (constant out index -> written back to HBM once, at end).
    @pl.when((l == 0) & (i == 0) & (k == 0))
    def _init():
        pooled_acc[...] = jnp.zeros_like(pooled_acc)
        out_ref[...] = jnp.zeros_like(out_ref)

    # ---- layer 0, first row-stripe: run input_layer (Linear + ReLU) on node
    #      tile `k` and persist it in the H carry (VMEM scratch).
    @pl.when((l == 0) & (i == 0))
    def _input_layer():
        h0 = jnp.dot(x_ref[...], w_in_ref[...],
                     preferred_element_type=jnp.float32)
        h0 = jnp.maximum(h0 + b_in_ref[...], 0.0)
        h_scr[pl.ds(row_k, tile_n), :] = h0

    # ---- first row-stripe of every layer: build the XW = H @ W_l cache for
    #      node tile `k` once (bf16); later row-stripes reuse it.
    @pl.when(i == 0)
    def _cache_xw():
        hk = h_scr[pl.ds(row_k, tile_n), :]
        xw = jnp.dot(hk, w_ref[0], preferred_element_type=jnp.float32)
        xw_scr[pl.ds(row_k, tile_n), :] = xw.astype(xw_scr.dtype)

    # ---- GCN aggregation: accumulate A[i, k] @ XW[k] over the node contraction.
    @pl.when(k == 0)
    def _zero_acc():
        m_acc[...] = jnp.zeros_like(m_acc)

    m_acc[...] += jnp.dot(a_ref[...], xw_scr[pl.ds(row_k, tile_n), :],
                          preferred_element_type=jnp.float32)

    # ---- last contraction step: bias + residual + LayerNorm + ReLU and write
    #      the new H row-stripe back into the carry.
    @pl.when(k == nk - 1)
    def _finalize_row():
        h_old = h_scr[pl.ds(row_i, tile_n), :]          # residual (Identity)
        y = m_acc[...] + b_ref[0] + h_old
        # LayerNorm over the TRUE hidden_dim.  Padded hidden lanes of y are
        # exactly zero, so un-masked sums divided by hidden_dim are exact.
        inv_h = 1.0 / float(hidden_dim)
        mean = jnp.sum(y, axis=-1, keepdims=True) * inv_h
        ex2 = jnp.sum(y * y, axis=-1, keepdims=True) * inv_h
        var = jnp.maximum(ex2 - mean * mean, 0.0)       # one-pass, clamped
        yn = (y - mean) * jax.lax.rsqrt(var + 1e-5)
        yn = yn * gamma_ref[0] + beta_ref[0]
        h_new = jnp.maximum(yn, 0.0)                    # ReLU (+ dropout=identity)
        h_scr[pl.ds(row_i, tile_n), :] = h_new

        # last layer: fold this row-stripe into the global_mean_pool accumulator
        @pl.when(l == nl - 1)
        def _pool():
            pooled_acc[...] += jnp.dot(pool_ref[...], h_new,
                                       preferred_element_type=jnp.float32)

        # very last grid step: output head (lane-dense padded output)
        @pl.when((l == nl - 1) & (i == ni - 1))
        def _head():
            out_ref[...] = (jnp.dot(pooled_acc[...], w_out_ref[...],
                                    preferred_element_type=jnp.float32)
                            + b_out_ref[...])


def graphtransgeo_forward(x, a_norm, pool, params, *, tile_n=128):
    """Full forward pass in one pallas_call.  Pads to lane/sublane multiples,
    streams per-layer weights over a layer grid axis, tiles the node axes."""
    N, IN = x.shape
    H = params["w_in"].shape[1]
    OUT = params["w_out"].shape[1]
    L = params["w_gcn"].shape[0]
    B = pool.shape[0]

    TN = tile_n
    N_pad = _round_up(N, TN)
    IN_pad = _round_up(IN, 128)
    H_pad = _round_up(H, 128)
    OUT_pad = _round_up(OUT, 128)
    B_pad = _round_up(B, 8)

    f32 = jnp.float32
    xp = _pad2(x.astype(f32), N_pad, IN_pad)
    ap = _pad2(a_norm.astype(f32), N_pad, N_pad).astype(jnp.bfloat16)   # bf16 adjacency
    pp = _pad2(pool.astype(f32), B_pad, N_pad)

    w_in = _pad2(params["w_in"].astype(f32), IN_pad, H_pad)
    b_in = _pad2(params["b_in"].reshape(1, -1).astype(f32), 1, H_pad)
    w_gcn = jnp.pad(params["w_gcn"].astype(f32),
                    ((0, 0), (0, H_pad - H), (0, H_pad - H)))
    b_gcn = jnp.pad(params["b_gcn"].reshape(L, 1, H).astype(f32),
                    ((0, 0), (0, 0), (0, H_pad - H)))
    gamma = jnp.pad(params["gamma"].reshape(L, 1, H).astype(f32),
                    ((0, 0), (0, 0), (0, H_pad - H)))       # pad lanes of gamma are 0
    beta = jnp.pad(params["beta"].reshape(L, 1, H).astype(f32),
                   ((0, 0), (0, 0), (0, H_pad - H)))
    w_out = _pad2(params["w_out"].astype(f32), H_pad, OUT_pad)
    b_out = _pad2(params["b_out"].reshape(1, -1).astype(f32), 1, OUT_pad)

    ni = N_pad // TN
    grid = (L, ni, ni)

    # x is only consumed at (layer 0, row-stripe 0); keep its block index constant
    # elsewhere so it is not re-DMA'd on every grid step.
    def x_map(l, i, k):
        return (jnp.where((l == 0) & (i == 0), k, 0), 0)

    in_specs = [
        pl.BlockSpec((TN, IN_pad), x_map),                                  # x
        pl.BlockSpec((TN, TN), lambda l, i, k: (i, k)),                     # a_norm (bf16)
        pl.BlockSpec((B_pad, TN), lambda l, i, k: (0, i)),                  # pool
        pl.BlockSpec((IN_pad, H_pad), lambda l, i, k: (0, 0)),              # w_in
        pl.BlockSpec((1, H_pad), lambda l, i, k: (0, 0)),                   # b_in
        pl.BlockSpec((1, H_pad, H_pad), lambda l, i, k: (l, 0, 0)),         # w_gcn[l]
        pl.BlockSpec((1, 1, H_pad), lambda l, i, k: (l, 0, 0)),             # b_gcn[l]
        pl.BlockSpec((1, 1, H_pad), lambda l, i, k: (l, 0, 0)),             # gamma[l]
        pl.BlockSpec((1, 1, H_pad), lambda l, i, k: (l, 0, 0)),             # beta[l]
        pl.BlockSpec((H_pad, OUT_pad), lambda l, i, k: (0, 0)),             # w_out
        pl.BlockSpec((1, OUT_pad), lambda l, i, k: (0, 0)),                 # b_out
    ]
    out_spec = pl.BlockSpec((B_pad, OUT_pad), lambda l, i, k: (0, 0))

    scratch_shapes = [
        pltpu.VMEM((N_pad, H_pad), jnp.float32),    # H carry across layers
        pltpu.VMEM((N_pad, H_pad), jnp.bfloat16),   # XW cache for current layer
        pltpu.VMEM((TN, H_pad), jnp.float32),       # aggregation accumulator
        pltpu.VMEM((B_pad, H_pad), jnp.float32),    # pooled accumulator
    ]

    # Explicit VMEM budget: scratch + 2x (double-buffered) block bytes + margin.
    blk_bytes = (TN * IN_pad * 4 + TN * TN * 2 + B_pad * TN * 4
                 + IN_pad * H_pad * 4 + H_pad * 4
                 + H_pad * H_pad * 4 + 3 * H_pad * 4
                 + H_pad * OUT_pad * 4 + OUT_pad * 4 + B_pad * OUT_pad * 4)
    scr_bytes = N_pad * H_pad * (4 + 2) + TN * H_pad * 4 + B_pad * H_pad * 4
    vmem_limit = int(min(max(2 * blk_bytes + scr_bytes + (8 << 20), 32 << 20), 64 << 20))

    kernel = functools.partial(_gtg_fused_kernel, H, TN)
    out = pl.pallas_call(
        kernel,
        out_shape=jax.ShapeDtypeStruct((B_pad, OUT_pad), jnp.float32),
        grid_spec=pltpu.PrefetchScalarGridSpec(
            num_scalar_prefetch=0,
            grid=grid,
            in_specs=in_specs,
            out_specs=out_spec,
            scratch_shapes=scratch_shapes),
        compiler_params=pltpu.CompilerParams(
            # The H carry / XW cache / pooled accumulator create cross-iteration
            # dependencies on every axis -> sequential ("arbitrary") grid.
            dimension_semantics=("arbitrary", "arbitrary", "arbitrary"),
            vmem_limit_bytes=vmem_limit),
    )(xp, ap, pp, w_in, b_in, w_gcn, b_gcn, gamma, beta, w_out, b_out)

    return out[:B, :OUT]


# ---------------------------------------------------------------------------
# Glue: dense normalized adjacency + mean-pool matrix (plain JAX setup).
# ---------------------------------------------------------------------------
def build_norm_adj(edge_index, num_nodes):
    """PyG GCNConv default: add self loops, symmetric D^-1/2 (A+I) D^-1/2.
    Convention: A_hat[dst, src] so out = A_hat @ x aggregates src -> dst."""
    src, dst = edge_index[0], edge_index[1]
    a = jnp.zeros((num_nodes, num_nodes), jnp.float32)
    a = a.at[dst, src].add(1.0)
    a = a + jnp.eye(num_nodes, dtype=jnp.float32)
    deg = jnp.sum(a, axis=1)
    d_inv_sqrt = 1.0 / jnp.sqrt(jnp.maximum(deg, 1e-12))
    return d_inv_sqrt[:, None] * a * d_inv_sqrt[None, :]


def build_mean_pool(batch, batch_size, num_nodes):
    """global_mean_pool as a dense [B, N] matrix."""
    onehot = (batch[None, :] == jnp.arange(batch_size)[:, None]).astype(jnp.float32)
    counts = jnp.maximum(onehot.sum(axis=1, keepdims=True), 1.0)
    return onehot / counts


# ---------------------------------------------------------------------------
# Deterministic parameter init (synthetic; matches module shapes).
# ---------------------------------------------------------------------------
def init_params(key, input_dim, hidden_dim, output_dim, num_layers):
    ks = jax.random.split(key, 8)
    s = 0.1
    return {
        "w_in":  s * jax.random.normal(ks[0], (input_dim, hidden_dim), jnp.float32),
        "b_in":  s * jax.random.normal(ks[1], (hidden_dim,), jnp.float32),
        "w_gcn": s * jax.random.normal(ks[2], (num_layers, hidden_dim, hidden_dim), jnp.float32),
        "b_gcn": s * jax.random.normal(ks[3], (num_layers, hidden_dim), jnp.float32),
        "gamma": 1.0 + s * jax.random.normal(ks[4], (num_layers, hidden_dim), jnp.float32),
        "beta":  s * jax.random.normal(ks[5], (num_layers, hidden_dim), jnp.float32),
        "w_out": s * jax.random.normal(ks[6], (hidden_dim, output_dim), jnp.float32),
        "b_out": s * jax.random.normal(ks[7], (output_dim,), jnp.float32),
    }


# ---------------------------------------------------------------------------
# Pure-JAX reference (mirrors the kernel's bf16 adjacency / XW operands).
# ---------------------------------------------------------------------------
def reference_forward(x, a_norm, pool, params):
    bf, f32 = jnp.bfloat16, jnp.float32
    a_bf = a_norm.astype(bf).astype(f32)
    h = jnp.maximum(x @ params["w_in"] + params["b_in"], 0.0)
    for l in range(params["w_gcn"].shape[0]):
        xw = (h @ params["w_gcn"][l]).astype(bf).astype(f32)
        m = a_bf @ xw + params["b_gcn"][l]
        y = m + h
        mean = y.mean(-1, keepdims=True)
        var = (y * y).mean(-1, keepdims=True) - mean * mean
        y = (y - mean) * jax.lax.rsqrt(jnp.maximum(var, 0.0) + 1e-5)
        y = y * params["gamma"][l] + params["beta"][l]
        h = jnp.maximum(y, 0.0)
    return (pool @ h) @ params["w_out"] + params["b_out"]


if __name__ == "__main__":
    # Small shapes, but large enough to exercise multiple node tiles (grid 3x2x2),
    # feature-axis padding (hidden 64 -> 128) and lane-dense padded output (2 -> 128).
    num_nodes, input_dim, hidden_dim, output_dim = 200, 16, 64, 2
    num_layers, batch_size = 3, 2
    nodes_per_graph = num_nodes // batch_size

    key = jax.random.PRNGKey(0)
    k_x, k_p = jax.random.split(key)

    x = jax.random.normal(k_x, (num_nodes, input_dim), jnp.float32)

    # Two independent ring graphs (both edge directions listed).
    srcs, dsts = [], []
    for g in range(batch_size):
        off = g * nodes_per_graph
        s = jnp.arange(nodes_per_graph, dtype=jnp.int32) + off
        d = (jnp.arange(nodes_per_graph, dtype=jnp.int32) + 1) % nodes_per_graph + off
        srcs += [s, d]
        dsts += [d, s]
    edge_index = jnp.stack([jnp.concatenate(srcs), jnp.concatenate(dsts)], axis=0)

    batch = jnp.repeat(jnp.arange(batch_size, dtype=jnp.int32), nodes_per_graph)

    a_norm = build_norm_adj(edge_index, num_nodes)
    pool = build_mean_pool(batch, batch_size, num_nodes)
    params = init_params(k_p, input_dim, hidden_dim, output_dim, num_layers)

    pred = graphtransgeo_forward(x, a_norm, pool, params)
    pred = jax.block_until_ready(pred)

    ref = reference_forward(x, a_norm, pool, params)
    assert pred.shape == (batch_size, output_dim), pred.shape
    assert jnp.allclose(pred, ref, atol=2e-2, rtol=2e-2), (pred, ref)

    print("KERNEL_OK")
</pallas_src>

<mosaic_0001>
module attributes {stable_mosaic.version = 11 : i64} {
  func.func @_gtg_fused_kernel(%arg0: i32, %arg1: i32, %arg2: i32, %arg3: memref<128x128xf32, #tpu.memory_space<vmem>>, %arg4: memref<128x128xbf16, #tpu.memory_space<vmem>>, %arg5: memref<8x128xf32, #tpu.memory_space<vmem>>, %arg6: memref<128x128xf32, #tpu.memory_space<vmem>>, %arg7: memref<1x128xf32, #tpu.memory_space<vmem>>, %arg8: memref<1x128x128xf32, #tpu.memory_space<vmem>>, %arg9: memref<1x1x128xf32, #tpu.memory_space<vmem>>, %arg10: memref<1x1x128xf32, #tpu.memory_space<vmem>>, %arg11: memref<1x1x128xf32, #tpu.memory_space<vmem>>, %arg12: memref<128x128xf32, #tpu.memory_space<vmem>>, %arg13: memref<1x128xf32, #tpu.memory_space<vmem>>, %arg14: memref<8x128xf32, #tpu.memory_space<vmem>>, %arg15: memref<256x128xf32, #tpu.memory_space<vmem>>, %arg16: memref<256x128xbf16, #tpu.memory_space<vmem>>, %arg17: memref<128x128xf32, #tpu.memory_space<vmem>>, %arg18: memref<8x128xf32, #tpu.memory_space<vmem>>) attributes {dimension_semantics = [#tpu.dimension_semantics<arbitrary>, #tpu.dimension_semantics<arbitrary>, #tpu.dimension_semantics<arbitrary>], iteration_bounds = array<i64: 3, 2, 2>, scalar_prefetch = 0 : i64, scratch_operands = 4 : i64, tpu.core_type = #tpu.core_type<tc>, window_params = [{transform_indices = @transform_0, window_bounds = array<i64: 128, 128>}, {transform_indices = @transform_1, window_bounds = array<i64: 128, 128>}, {transform_indices = @transform_2, window_bounds = array<i64: 8, 128>}, {pipeline_mode = #tpu.pipeline_mode<synchronous>, transform_indices = @transform_3, window_bounds = array<i64: 128, 128>}, {pipeline_mode = #tpu.pipeline_mode<synchronous>, transform_indices = @transform_4, window_bounds = array<i64: 1, 128>}, {transform_indices = @transform_5, window_bounds = array<i64: 1, 128, 128>}, {transform_indices = @transform_6, window_bounds = array<i64: 1, 1, 128>}, {transform_indices = @transform_7, window_bounds = array<i64: 1, 1, 128>}, {transform_indices = @transform_8, window_bounds = array<i64: 1, 1, 128>}, {pipeline_mode = #tpu.pipeline_mode<synchronous>, transform_indices = @transform_9, window_bounds = array<i64: 128, 128>}, {pipeline_mode = #tpu.pipeline_mode<synchronous>, transform_indices = @transform_10, window_bounds = array<i64: 1, 128>}, {pipeline_mode = #tpu.pipeline_mode<synchronous>, transform_indices = @transform_11, window_bounds = array<i64: 8, 128>}]} {
    %c128_i32 = arith.constant 128 : i32
    %0 = arith.muli %arg2, %c128_i32 : i32
    %1 = tpu.assume_multiple %0, 128 : i32
    %c128_i32_0 = arith.constant 128 : i32
    %2 = arith.muli %arg1, %c128_i32_0 : i32
    %3 = tpu.assume_multiple %2, 128 : i32
    %c0_i32 = arith.constant 0 : i32
    %4 = arith.cmpi eq, %arg0, %c0_i32 : i32
    %c0_i32_1 = arith.constant 0 : i32
    %5 = arith.cmpi eq, %arg1, %c0_i32_1 : i32
    %6 = arith.andi %4, %5 : i1
    %c0_i32_2 = arith.constant 0 : i32
    %7 = arith.cmpi eq, %arg2, %c0_i32_2 : i32
    %8 = arith.andi %6, %7 : i1
    %9 = arith.extui %8 : i1 to i32
    %c0_i32_3 = arith.constant 0 : i32
    %10 = arith.cmpi ne, %9, %c0_i32_3 : i32
    scf.if %10 {
      %cst_18 = arith.constant 0.000000e+00 : f32
      %32 = vector.broadcast %cst_18 : f32 to vector<8x128xf32>
      %c0_19 = arith.constant 0 : index
      %c0_20 = arith.constant 0 : index
      %33 = vector.load %arg18[%c0_19, %c0_20] : memref<8x128xf32, #tpu.memory_space<vmem>>, vector<8x128xf32>
      tpu.vector_store %arg18[%c0_19, %c0_20], %32 {strides = array<i32>} : memref<8x128xf32, #tpu.memory_space<vmem>>, vector<8x128xf32>,
      %cst_21 = arith.constant 0.000000e+00 : f32
      %34 = vector.broadcast %cst_21 : f32 to vector<8x128xf32>
      %c0_22 = arith.constant 0 : index
      %c0_23 = arith.constant 0 : index
      %35 = vector.load %arg14[%c0_22, %c0_23] : memref<8x128xf32, #tpu.memory_space<vmem>>, vector<8x128xf32>
      tpu.vector_store %arg14[%c0_22, %c0_23], %34 {strides = array<i32>} : memref<8x128xf32, #tpu.memory_space<vmem>>, vector<8x128xf32>,
    } else {
    }
    %c0_i32_4 = arith.constant 0 : i32
    %11 = arith.cmpi eq, %arg0, %c0_i32_4 : i32
    %c0_i32_5 = arith.constant 0 : i32
    %12 = arith.cmpi eq, %arg1, %c0_i32_5 : i32
    %13 = arith.andi %11, %12 : i1
    %14 = arith.extui %13 : i1 to i32
    %c0_i32_6 = arith.constant 0 : i32
    %15 = arith.cmpi ne, %14, %c0_i32_6 : i32
    scf.if %15 {
      %c0_18 = arith.constant 0 : index
      %c0_19 = arith.constant 0 : index
      %32 = vector.load %arg3[%c0_18, %c0_19] : memref<128x128xf32, #tpu.memory_space<vmem>>, vector<128x128xf32>
      %c0_20 = arith.constant 0 : index
      %c0_21 = arith.constant 0 : index
      %33 = vector.load %arg6[%c0_20, %c0_21] : memref<128x128xf32, #tpu.memory_space<vmem>>, vector<128x128xf32>
      %cst_22 = arith.constant dense<0.000000e+00> : vector<128x128xf32>
      %34 = tpu.matmul %32, %33, %cst_22 {dimension_numbers = #tpu.dot_dimension_numbers<[1], [0], [0], [1], [0, 0, 1, 1], [], []>} : vector<128x128xf32>, vector<128x128xf32>, vector<128x128xf32> -> vector<128x128xf32>
      %c0_23 = arith.constant 0 : index
      %c0_24 = arith.constant 0 : index
      %35 = vector.load %arg7[%c0_23, %c0_24] : memref<1x128xf32, #tpu.memory_space<vmem>>, vector<1x128xf32>
      %36 = vector.broadcast %35 : vector<1x128xf32> to vector<128x128xf32>
      %37 = arith.addf %34, %36 : vector<128x128xf32>
      %cst_25 = arith.constant 0.000000e+00 : f32
      %38 = vector.broadcast %cst_25 : f32 to vector<128x128xf32>
      %39 = arith.maximumf %37, %38 : vector<128x128xf32>
      %40 = arith.index_cast %1 : i32 to index
      %c0_26 = arith.constant 0 : index
      %41 = vector.load %arg15[%40, %c0_26] : memref<256x128xf32, #tpu.memory_space<vmem>>, vector<128x128xf32>
      tpu.vector_store %arg15[%40, %c0_26], %39 {strides = array<i32>} : memref<256x128xf32, #tpu.memory_space<vmem>>, vector<128x128xf32>,
    } else {
    }
    %c0_i32_7 = arith.constant 0 : i32
    %16 = arith.cmpi eq, %arg1, %c0_i32_7 : i32
    %17 = arith.extui %16 : i1 to i32
    %c0_i32_8 = arith.constant 0 : i32
    %18 = arith.cmpi ne, %17, %c0_i32_8 : i32
    scf.if %18 {
      %32 = arith.index_cast %1 : i32 to index
      %c0_18 = arith.constant 0 : index
      %33 = vector.load %arg15[%32, %c0_18] : memref<256x128xf32, #tpu.memory_space<vmem>>, vector<128x128xf32>
      %c0_19 = arith.constant 0 : index
      %c0_20 = arith.constant 0 : index
      %c0_21 = arith.constant 0 : index
      %34 = vector.load %arg8[%c0_19, %c0_20, %c0_21] : memref<1x128x128xf32, #tpu.memory_space<vmem>>, vector<1x128x128xf32>
      %35 = vector.shape_cast %34 : vector<1x128x128xf32> to vector<128x128xf32>
      %cst_22 = arith.constant dense<0.000000e+00> : vector<128x128xf32>
      %36 = tpu.matmul %33, %35, %cst_22 {dimension_numbers = #tpu.dot_dimension_numbers<[1], [0], [0], [1], [0, 0, 1, 1], [], []>} : vector<128x128xf32>, vector<128x128xf32>, vector<128x128xf32> -> vector<128x128xf32>
      %37 = arith.truncf %36 : vector<128x128xf32> to vector<128x128xbf16>
      %38 = arith.index_cast %1 : i32 to index
      %c0_23 = arith.constant 0 : index
      %39 = vector.load %arg16[%38, %c0_23] : memref<256x128xbf16, #tpu.memory_space<vmem>>, vector<128x128xbf16>
      tpu.vector_store %arg16[%38, %c0_23], %37 {strides = array<i32>} : memref<256x128xbf16, #tpu.memory_space<vmem>>, vector<128x128xbf16>,
    } else {
    }
    %c0_i32_9 = arith.constant 0 : i32
    %19 = arith.cmpi eq, %arg2, %c0_i32_9 : i32
    %20 = arith.extui %19 : i1 to i32
    %c0_i32_10 = arith.constant 0 : i32
    %21 = arith.cmpi ne, %20, %c0_i32_10 : i32
    scf.if %21 {
      %cst_18 = arith.constant 0.000000e+00 : f32
      %32 = vector.broadcast %cst_18 : f32 to vector<128x128xf32>
      %c0_19 = arith.constant 0 : index
      %c0_20 = arith.constant 0 : index
      %33 = vector.load %arg17[%c0_19, %c0_20] : memref<128x128xf32, #tpu.memory_space<vmem>>, vector<128x128xf32>
      tpu.vector_store %arg17[%c0_19, %c0_20], %32 {strides = array<i32>} : memref<128x128xf32, #tpu.memory_space<vmem>>, vector<128x128xf32>,
    } else {
    }
    %c0 = arith.constant 0 : index
    %c0_11 = arith.constant 0 : index
    %22 = vector.load %arg17[%c0, %c0_11] : memref<128x128xf32, #tpu.memory_space<vmem>>, vector<128x128xf32>
    %c0_12 = arith.constant 0 : index
    %c0_13 = arith.constant 0 : index
    %23 = vector.load %arg4[%c0_12, %c0_13] : memref<128x128xbf16, #tpu.memory_space<vmem>>, vector<128x128xbf16>
    %24 = arith.index_cast %1 : i32 to index
    %c0_14 = arith.constant 0 : index
    %25 = vector.load %arg16[%24, %c0_14] : memref<256x128xbf16, #tpu.memory_space<vmem>>, vector<128x128xbf16>
    %cst = arith.constant dense<0.000000e+00> : vector<128x128xf32>
    %26 = tpu.matmul %23, %25, %cst {dimension_numbers = #tpu.dot_dimension_numbers<[1], [0], [0], [1], [0, 0, 1, 1], [], []>} : vector<128x128xbf16>, vector<128x128xbf16>, vector<128x128xf32> -> vector<128x128xf32>
    %27 = arith.addf %22, %26 : vector<128x128xf32>
    %c0_15 = arith.constant 0 : index
    %c0_16 = arith.constant 0 : index
    %28 = vector.load %arg17[%c0_15, %c0_16] : memref<128x128xf32, #tpu.memory_space<vmem>>, vector<128x128xf32>
    tpu.vector_store %arg17[%c0_15, %c0_16], %27 {strides = array<i32>} : memref<128x128xf32, #tpu.memory_space<vmem>>, vector<128x128xf32>,
    %c1_i32 = arith.constant 1 : i32
    %29 = arith.cmpi eq, %arg2, %c1_i32 : i32
    %30 = arith.extui %29 : i1 to i32
    %c0_i32_17 = arith.constant 0 : i32
    %31 = arith.cmpi ne, %30, %c0_i32_17 : i32
    scf.if %31 {
      %32 = arith.index_cast %3 : i32 to index
      %c0_18 = arith.constant 0 : index
      %33 = vector.load %arg15[%32, %c0_18] : memref<256x128xf32, #tpu.memory_space<vmem>>, vector<128x128xf32>
      %c0_19 = arith.constant 0 : index
      %c0_20 = arith.constant 0 : index
      %34 = vector.load %arg17[%c0_19, %c0_20] : memref<128x128xf32, #tpu.memory_space<vmem>>, vector<128x128xf32>
      %c0_21 = arith.constant 0 : index
      %c0_22 = arith.constant 0 : index
      %c0_23 = arith.constant 0 : index
      %35 = vector.load %arg9[%c0_21, %c0_22, %c0_23] : memref<1x1x128xf32, #tpu.memory_space<vmem>>, vector<1x1x128xf32>
      %36 = vector.shape_cast %35 : vector<1x1x128xf32> to vector<1x128xf32>
      %37 = vector.broadcast %36 : vector<1x128xf32> to vector<128x128xf32>
      %38 = arith.addf %34, %37 : vector<128x128xf32>
      %39 = arith.addf %38, %33 : vector<128x128xf32>
      %cst_24 = arith.constant dense<0.000000e+00> : vector<128xf32>
      %40 = vector.multi_reduction <add>, %39, %cst_24 [1] : vector<128x128xf32> to vector<128xf32>
      %41 = vector.shape_cast %40 : vector<128xf32> to vector<128x1xf32>
      %cst_25 = arith.constant 1.562500e-02 : f32
      %42 = vector.broadcast %cst_25 : f32 to vector<128x1xf32>
      %43 = arith.mulf %41, %42 : vector<128x1xf32>
      %44 = arith.mulf %39, %39 : vector<128x128xf32>
      %cst_26 = arith.constant dense<0.000000e+00> : vector<128xf32>
      %45 = vector.multi_reduction <add>, %44, %cst_26 [1] : vector<128x128xf32> to vector<128xf32>
      %46 = vector.shape_cast %45 : vector<128xf32> to vector<128x1xf32>
      %cst_27 = arith.constant 1.562500e-02 : f32
      %47 = vector.broadcast %cst_27 : f32 to vector<128x1xf32>
      %48 = arith.mulf %46, %47 : vector<128x1xf32>
      %49 = arith.mulf %43, %43 : vector<128x1xf32>
      %50 = arith.subf %48, %49 : vector<128x1xf32>
      %cst_28 = arith.constant 0.000000e+00 : f32
      %51 = vector.broadcast %cst_28 : f32 to vector<128x1xf32>
      %52 = arith.maximumf %50, %51 : vector<128x1xf32>
      %53 = vector.broadcast %43 : vector<128x1xf32> to vector<128x128xf32>
      %54 = arith.subf %39, %53 : vector<128x128xf32>
      %cst_29 = arith.constant 9.99999974E-6 : f32
      %55 = vector.broadcast %cst_29 : f32 to vector<128x1xf32>
      %56 = arith.addf %52, %55 : vector<128x1xf32>
      %57 = math.rsqrt %56 : vector<128x1xf32>
      %58 = vector.broadcast %57 : vector<128x1xf32> to vector<128x128xf32>
      %59 = arith.mulf %54, %58 : vector<128x128xf32>
      %c0_30 = arith.constant 0 : index
      %c0_31 = arith.constant 0 : index
      %c0_32 = arith.constant 0 : index
      %60 = vector.load %arg10[%c0_30, %c0_31, %c0_32] : memref<1x1x128xf32, #tpu.memory_space<vmem>>, vector<1x1x128xf32>
      %61 = vector.shape_cast %60 : vector<1x1x128xf32> to vector<1x128xf32>
      %62 = vector.broadcast %61 : vector<1x128xf32> to vector<128x128xf32>
      %63 = arith.mulf %59, %62 : vector<128x128xf32>
      %c0_33 = arith.constant 0 : index
      %c0_34 = arith.constant 0 : index
      %c0_35 = arith.constant 0 : index
      %64 = vector.load %arg11[%c0_33, %c0_34, %c0_35] : memref<1x1x128xf32, #tpu.memory_space<vmem>>, vector<1x1x128xf32>
      %65 = vector.shape_cast %64 : vector<1x1x128xf32> to vector<1x128xf32>
      %66 = vector.broadcast %65 : vector<1x128xf32> to vector<128x128xf32>
      %67 = arith.addf %63, %66 : vector<128x128xf32>
      %cst_36 = arith.constant 0.000000e+00 : f32
      %68 = vector.broadcast %cst_36 : f32 to vector<128x128xf32>
      %69 = arith.maximumf %67, %68 : vector<128x128xf32>
      %70 = arith.index_cast %3 : i32 to index
      %c0_37 = arith.constant 0 : index
      %71 = vector.load %arg15[%70, %c0_37] : memref<256x128xf32, #tpu.memory_space<vmem>>, vector<128x128xf32>
      tpu.vector_store %arg15[%70, %c0_37], %69 {strides = array<i32>} : memref<256x128xf32, #tpu.memory_space<vmem>>, vector<128x128xf32>,
      %c2_i32 = arith.constant 2 : i32
      %72 = arith.cmpi eq, %arg0, %c2_i32 : i32
      %73 = arith.extui %72 : i1 to i32
      %c0_i32_38 = arith.constant 0 : i32
      %74 = arith.cmpi ne, %73, %c0_i32_38 : i32
      scf.if %74 {
        %c0_42 = arith.constant 0 : index
        %c0_43 = arith.constant 0 : index
        %80 = vector.load %arg18[%c0_42, %c0_43] : memref<8x128xf32, #tpu.memory_space<vmem>>, vector<8x128xf32>
        %c0_44 = arith.constant 0 : index
        %c0_45 = arith.constant 0 : index
        %81 = vector.load %arg5[%c0_44, %c0_45] : memref<8x128xf32, #tpu.memory_space<vmem>>, vector<8x128xf32>
        %cst_46 = arith.constant dense<0.000000e+00> : vector<8x128xf32>
        %82 = tpu.matmul %81, %69, %cst_46 {dimension_numbers = #tpu.dot_dimension_numbers<[1], [0], [0], [1], [0, 0, 1, 1], [], []>} : vector<8x128xf32>, vector<128x128xf32>, vector<8x128xf32> -> vector<8x128xf32>
        %83 = arith.addf %80, %82 : vector<8x128xf32>
        %c0_47 = arith.constant 0 : index
        %c0_48 = arith.constant 0 : index
        %84 = vector.load %arg18[%c0_47, %c0_48] : memref<8x128xf32, #tpu.memory_space<vmem>>, vector<8x128xf32>
        tpu.vector_store %arg18[%c0_47, %c0_48], %83 {strides = array<i32>} : memref<8x128xf32, #tpu.memory_space<vmem>>, vector<8x128xf32>,
      } else {
      }
      %c2_i32_39 = arith.constant 2 : i32
      %75 = arith.cmpi eq, %arg0, %c2_i32_39 : i32
      %c1_i32_40 = arith.constant 1 : i32
      %76 = arith.cmpi eq, %arg1, %c1_i32_40 : i32
      %77 = arith.andi %75, %76 : i1
      %78 = arith.extui %77 : i1 to i32
      %c0_i32_41 = arith.constant 0 : i32
      %79 = arith.cmpi ne, %78, %c0_i32_41 : i32
      scf.if %79 {
        %c0_42 = arith.constant 0 : index
        %c0_43 = arith.constant 0 : index
        %80 = vector.load %arg18[%c0_42, %c0_43] : memref<8x128xf32, #tpu.memory_space<vmem>>, vector<8x128xf32>
        %c0_44 = arith.constant 0 : index
        %c0_45 = arith.constant 0 : index
        %81 = vector.load %arg12[%c0_44, %c0_45] : memref<128x128xf32, #tpu.memory_space<vmem>>, vector<128x128xf32>
        %cst_46 = arith.constant dense<0.000000e+00> : vector<8x128xf32>
        %82 = tpu.matmul %80, %81, %cst_46 {dimension_numbers = #tpu.dot_dimension_numbers<[1], [0], [0], [1], [0, 0, 1, 1], [], []>} : vector<8x128xf32>, vector<128x128xf32>, vector<8x128xf32> -> vector<8x128xf32>
        %c0_47 = arith.constant 0 : index
        %c0_48 = arith.constant 0 : index
        %83 = vector.load %arg13[%c0_47, %c0_48] : memref<1x128xf32, #tpu.memory_space<vmem>>, vector<1x128xf32>
        %84 = vector.broadcast %83 : vector<1x128xf32> to vector<8x128xf32>
        %85 = arith.addf %82, %84 : vector<8x128xf32>
        %c0_49 = arith.constant 0 : index
        %c0_50 = arith.constant 0 : index
        %86 = vector.load %arg14[%c0_49, %c0_50] : memref<8x128xf32, #tpu.memory_space<vmem>>, vector<8x128xf32>
        tpu.vector_store %arg14[%c0_49, %c0_50], %85 {strides = array<i32>} : memref<8x128xf32, #tpu.memory_space<vmem>>, vector<8x128xf32>,
      } else {
      }
    } else {
    }
    return
  }
  func.func @transform_0(%arg0: i32, %arg1: i32, %arg2: i32) -> (i32, i32) {
    %c0_i32 = arith.constant 0 : i32
    %0 = arith.cmpi eq, %arg0, %c0_i32 : i32
    %c0_i32_0 = arith.constant 0 : i32
    %1 = arith.cmpi eq, %arg1, %c0_i32_0 : i32
    %2 = arith.andi %0, %1 : i1
    %c0_i32_1 = arith.constant 0 : i32
    %3 = arith.select %2, %arg2, %c0_i32_1 : i32
    %c0_i32_2 = arith.constant 0 : i32
    %c0_i32_3 = arith.constant 0 : i32
    return %3, %c0_i32_2 : i32, i32
  }
  func.func @transform_1(%arg0: i32, %arg1: i32, %arg2: i32) -> (i32, i32) {
    %c0_i32 = arith.constant 0 : i32
    return %arg1, %arg2 : i32, i32
  }
  func.func @transform_2(%arg0: i32, %arg1: i32, %arg2: i32) -> (i32, i32) {
    %c0_i32 = arith.constant 0 : i32
    %c0_i32_0 = arith.constant 0 : i32
    return %c0_i32, %arg1 : i32, i32
  }
  func.func @transform_3(%arg0: i32, %arg1: i32, %arg2: i32) -> (i32, i32) {
    %c0_i32 = arith.constant 0 : i32
    %c0_i32_0 = arith.constant 0 : i32
    %c0_i32_1 = arith.constant 0 : i32
    return %c0_i32, %c0_i32_0 : i32, i32
  }
  func.func @transform_4(%arg0: i32, %arg1: i32, %arg2: i32) -> (i32, i32) {
    %c0_i32 = arith.constant 0 : i32
    %c0_i32_0 = arith.constant 0 : i32
    %c0_i32_1 = arith.constant 0 : i32
    return %c0_i32, %c0_i32_0 : i32, i32
  }
  func.func @transform_5(%arg0: i32, %arg1: i32, %arg2: i32) -> (i32, i32, i32) {
    %c0_i32 = arith.constant 0 : i32
    %c0_i32_0 = arith.constant 0 : i32
    %c0_i32_1 = arith.constant 0 : i32
    return %arg0, %c0_i32, %c0_i32_0 : i32, i32, i32
  }
  func.func @transform_6(%arg0: i32, %arg1: i32, %arg2: i32) -> (i32, i32, i32) {
    %c0_i32 = arith.constant 0 : i32
    %c0_i32_0 = arith.constant 0 : i32
    %c0_i32_1 = arith.constant 0 : i32
    return %arg0, %c0_i32, %c0_i32_0 : i32, i32, i32
  }
  func.func @transform_7(%arg0: i32, %arg1: i32, %arg2: i32) -> (i32, i32, i32) {
    %c0_i32 = arith.constant 0 : i32
    %c0_i32_0 = arith.constant 0 : i32
    %c0_i32_1 = arith.constant 0 : i32
    return %arg0, %c0_i32, %c0_i32_0 : i32, i32, i32
  }
  func.func @transform_8(%arg0: i32, %arg1: i32, %arg2: i32) -> (i32, i32, i32) {
    %c0_i32 = arith.constant 0 : i32
    %c0_i32_0 = arith.constant 0 : i32
    %c0_i32_1 = arith.constant 0 : i32
    return %arg0, %c0_i32, %c0_i32_0 : i32, i32, i32
  }
  func.func @transform_9(%arg0: i32, %arg1: i32, %arg2: i32) -> (i32, i32) {
    %c0_i32 = arith.constant 0 : i32
    %c0_i32_0 = arith.constant 0 : i32
    %c0_i32_1 = arith.constant 0 : i32
    return %c0_i32, %c0_i32_0 : i32, i32
  }
  func.func @transform_10(%arg0: i32, %arg1: i32, %arg2: i32) -> (i32, i32) {
    %c0_i32 = arith.constant 0 : i32
    %c0_i32_0 = arith.constant 0 : i32
    %c0_i32_1 = arith.constant 0 : i32
    return %c0_i32, %c0_i32_0 : i32, i32
  }
  func.func @transform_11(%arg0: i32, %arg1: i32, %arg2: i32) -> (i32, i32) {
    %c0_i32 = arith.constant 0 : i32
    %c0_i32_0 = arith.constant 0 : i32
    %c0_i32_1 = arith.constant 0 : i32
    return %c0_i32, %c0_i32_0 : i32, i32
  }
}

</mosaic_0001>

<bundles_post_ra>
// kernel: tpu_custom_call.1
= control target key start
LH: loop header
LB: loop body
LE: loop exit
PB: predicated region body
PF: predicated region fallthrough
CT: control target
= control target key end

     0   :  { %s4403_s0 = inlined_call_operand.hbm [shape: f32[256,128], index: 0, kind: input, shape index: {}]   ;;  %s4404_s1 = inlined_call_operand.hbm [shape: bf16[256,256], index: 1, kind: input, shape index: {}]   ;;  %s4405_s2 = inlined_call_operand.hbm [shape: f32[8,256], index: 2, kind: input, shape index: {}]   ;;  %s4406_s3 = inlined_call_operand.hbm [shape: f32[128,128], index: 3, kind: input, shape index: {}]   ;;  %s4407_s4 = inlined_call_operand.vmem [shape: f32[1,128], index: 4, kind: input, shape index: {}]   ;;  %s4408_s5 = inlined_call_operand.hbm [shape: f32[3,128,128], index: 5, kind: input, shape index: {}]   ;;  %s4409_s6 = inlined_call_operand.vmem [shape: f32[3,1,128], index: 6, kind: input, shape index: {}]   ;;  %s4410_s7 = inlined_call_operand.vmem [shape: f32[3,1,128], index: 7, kind: input, shape index: {}]   ;;  %s4411_s8 = inlined_call_operand.vmem [shape: f32[3,1,128], index: 8, kind: input, shape index: {}]   ;;  %s4412_s9 = inlined_call_operand.hbm [shape: f32[128,128], index: 9, kind: input, shape index: {}]   ;;  %s4413_s10 = inlined_call_operand.vmem [shape: f32[1,128], index: 10, kind: input, shape index: {}]   ;;  %s4414_s11 = inlined_call_operand.hbm [shape: f32[8,128], index: 11, kind: output, shape index: {}]  }
   0x1   :  { %4448 = sst [smem:[#allocation41_spill]] %s4403_s0 }
   0x2   :  { %4449 = sst [smem:[#allocation42_spill]] %s4404_s1 }
   0x3   :  { %4450 = sst [smem:[#allocation43_spill]] %s4405_s2 }
   0x4   :  { %4451 = sst [smem:[#allocation44_spill]] %s4406_s3 }
   0x5   :  { %4452 = sst [smem:[#allocation45_spill]] %s4407_s4 }
   0x6   :  { %4453 = sst [smem:[#allocation46_spill]] %s4408_s5 }
   0x7   :  { %4454 = sst [smem:[#allocation47_spill]] %s4409_s6 }
   0x8   :  { %4455 = sst [smem:[#allocation48_spill]] %s4410_s7 }
   0x9   :  { %4456 = sst [smem:[#allocation49_spill]] %s4411_s8 }
   0xa   :  { %4457 = sst [smem:[#allocation50_spill]] %s4412_s9 }
   0xb   :  { %4458 = sst [smem:[#allocation51_spill]] %s4413_s10 }
   0xc   :  { %4459 = sst [smem:[#allocation52_spill]] %s4414_s11 }
   0xd   :  { %16 = vsyncpa [#allocation7], 0 }
   0xe   :  { %18 = vsyncpa [#allocation7 + $0x1], 0 }
   0xf   :  { %19 = vsyncpa [#allocation10], 0 }
  0x10   :  { %21 = vsyncpa [#allocation10 + $0x1], 0 }
  0x11   :  { %22 = vsyncpa [#allocation13], 0 }
  0x12   :  { %23 = vsyncpa [#allocation8], 0  ;;  %s3304_s17 = smov 0   ;;  %s3306_s18 = smov 0  }
  0x13   :  { %s3308_s19 = smov 0   ;;  %s3310_s20 = smov 0  }
  0x14   :  { %s3312_s21 = smov 0   ;;  %s3314_s22 = smov 0  }
  0x15   :  { %s3316_s23 = smov 0   ;;  %s3318_s24 = smov 0  }
  0x16   :  { %s3320_s25 = smov 0   ;;  %s3322_s26 = smov 0  }
  0x17   :  { %s3324_s27 = smov 0   ;;  %s3326_s28 = smov 0  }
  0x18   :  { %s3328_s29 = smov 0   ;;  %s3330_s30 = smov 0  }
  0x19   :  { %s3332_s12 = smov 0   ;;  %s3334_s13 = smov 0  }
  0x1a   :  { %s3336_s14 = smov 0   ;;  %s3338_s15 = smov 0  }
  0x1b   :  { %s3340_s16 = smov 0  }
  0x1c LB: > { %4460 = sst [smem:[#allocation24_spill]] %s3151_s17  ;;  %s3400_s11 = sadd.s32 4294967295, %s3223_s16   ;;  %s3223_s16 = sphi %s3340_s16, %s29_s16   ;;  %s3219_s15 = sphi %s3338_s15, %s4569_s15   ;;  %s3215_s14 = sphi %s3336_s14, %s4581_s14   ;;  %s3211_s13 = sphi %s3334_s13, %s4566_s13   ;;  %s3207_s12 = sphi %s3332_s12, %s4580_s12   ;;  %s3203_s30 = sphi %s3330_s30, %s4579_s30   ;;  %s3199_s29 = sphi %s3328_s29, %s4564_s29   ;;  %s3195_s28 = sphi %s3326_s28, %s4578_s28   ;;  %s3191_s27 = sphi %s3324_s27, %s4577_s27   ;;  %s3187_s26 = sphi %s3322_s26, %s4576_s26   ;;  %s3183_s25 = sphi %s3320_s25, %s4575_s25   ;;  %s3179_s24 = sphi %s3318_s24, %s4574_s24   ;;  %s3175_s23 = sphi %s3316_s23, %s4573_s23   ;;  %s3171_s22 = sphi %s3314_s22, %s4572_s22   ;;  %s3167_s21 = sphi %s3312_s21, %s4571_s21   ;;  %s3163_s20 = sphi %s3310_s20, %s4561_s20   ;;  %s3159_s19 = sphi %s3308_s19, %s4560_s19   ;;  %s3155_s18 = sphi %s3306_s18, %s4568_s18   ;;  %s3151_s17 = sphi %s3304_s17, %s4558_s17  }
  0x1d   : > { %4461 = sst [smem:[#allocation25_spill]] %s3155_s18  ;;  %p2049_p0 = scmp.ge.s32.totalorder %s3223_s16, 1 }
  0x1e   : > { %4462 = sst [smem:[#allocation26_spill]] %s3159_s19  ;;  %p4422_p1 = scmp.eq.s32.totalorder %s3400_s11, 0 }
  0x1f   : > { %4463 = sst [smem:[#allocation27_spill]] %s3163_s20  ;;  %p352_p2 = scmp.lt.s32.totalorder %s3223_s16, 13 }
  0x20   : > { %4464 = sst [smem:[#allocation28_spill]] %s3167_s21  ;;  %s3225_s4 = smov [#allocation15]  }
  0x21   : > { %4465 = sst [smem:[#allocation29_spill]] %s3191_s27  ;;  %p3405_p3 = pnand %p2049_p0, %p352_p2 }
  0x22   : > { %4466 = sst [smem:[#allocation30_spill]] %s3199_s29  ;;  %s380_s8 = sshll.u32 %s3225_s4, 4  ;;  %s381_s8 = int_to_ptr.vmem [resolvable:$true] %s380_s8 }
  0x23   : > { %4467 = sst [smem:[#allocation31_spill]] %s3203_s30  ;;  %p2609_p4 = pneg %p3405_p3 }
  0x24   : > { %4468 = sst [smem:[#allocation32_spill]] %s3207_s12  ;;  %s4474_s9 = sld [smem:[#allocation50_spill]] }
  0x25   : > { %4469 = sst [smem:[#allocation33_spill]] %s3211_s13  ;;  %p3413_p5 = pnand %p2609_p4, %p4422_p1 }
  0x26   : > { %4470 = sst [smem:[#allocation34_spill]] %s3219_s15 }
  0x27   : > { %s4471_s10 = scalar_select %p3405_p3, 1, 0 }
  0x28   : > { %p4439_p7 = pneg %p3413_p5 }
  0x29   : > { %4472 = sst [smem:[#allocation35_spill]] %s4471_s10 }
  0x2a   : > { %s2843_s29 = scalar_lea.hbm %s4474_s9, 2048 }
  0x2b   : > { %p2844_p6 = scmp.ne.s32.totalorder %s4474_s9, %s2843_s29  ;;  %p2850_p10 = scmp.lt.u32.totalorder %s2843_s29, %s4474_s9 }
  0x2d   : > { %p2846_p8 = pnand %p4439_p7, %p2844_p6 }
  0x2f   : > { %p2847_p9 = pneg %p2846_p8 }
  0x31   : > { %p2852_p11 = pnand %p2850_p10, %p2847_p9 }
  0x33   : > { %2855 = shalt.err (!%p2852_p11)
}
  0x34   : > { %s2856_s6 = scalar_lea.vmem %s381_s8, 2048  ;;  %p2864_p2 = scmp.lt.s32.totalorder %s381_s8, %s381_s8 }
  0x35   : > { %p2857_p12 = scmp.ne.s32.totalorder %s381_s8, %s2856_s6  ;;  %p2865_p4 = scmp.lt.s32.totalorder %s2856_s6, %s2856_s6 }
  0x37   : > { %p2859_p13 = pnand %p2857_p12, %p4439_p7  ;;  %p2866_p1 = por %p2865_p4, %p2864_p2 }
  0x39   : > { %p2860_p0 = pneg %p2859_p13 }
  0x3b   : > { %p2867_p3 = pnand %p2866_p1, %p2860_p0 }
  0x3d   : > { %2870 = shalt.err (!%p2867_p3)
}
  0x3e   : > { %s4424_s5 = smov 128   ;;  %s4426_s10 = smov 8  }
  0x3f   : > { %2615 = dma.hbm_to_vmem [thread:$0]  (!%p3413_p5), %s4474_s9, 2048, %s381_s8, [#allocation10], %s4424_s5, %s4424_s5, %s4426_s10  }
  0x40   : > { %s41_s12 = sadd.s32 1, %s3211_s13  ;;  %s44_s4 = sadd.s32 1, %s3215_s14 }
  0x41   : > { %p42_p1 = scmp.ge.s32.totalorder %s41_s12, 2  ;;  %s48_s6 = sadd.s32 1, %s3219_s15 }
  0x42   : > { %p52_p3 = scmp.eq.s32.totalorder %s3219_s15, 0  ;;  %p53_p6 = scmp.eq.s32.totalorder %s3215_s14, 0 }
  0x43   : > { %s4583_s12 = smov (%p42_p1, %s41_s12), 0  ;;  %s4585_s4 = smov (!%p42_p1, %s44_s4), %s3215_s14 }
  0x44   : > { %4475 = sst [smem:[#allocation36_spill]] %s4583_s12  ;;  %p46_p8 = scmp.ge.s32.totalorder %s4585_s4, 2 }
  0x45   : > { %p72_p9 = scmp.ne.s32.totalorder %s3195_s28, %s3191_s27  ;;  %p54_p10 = pnand %p53_p6, %p52_p3 }
  0x46   : > { %p4441_p11 = scmp.eq.s32.totalorder %s3223_s16, 0  ;;  %s4587_s4 = smov (%p46_p8, %s4585_s4), 0 }
  0x47   : > { %4476 = sst [smem:[#allocation37_spill]] %s4587_s4  ;;  %s4589_s6 = smov (!%p46_p8, %s48_s6), %s3219_s15 }
  0x48   : > { %s2047_s8 = scalar_select %p54_p10, 0, %s3211_s13 }
  0x49   : > { %p50_p12 = scmp.ge.s32.totalorder %s4589_s6, 3  ;;  %p58_p13 = scmp.eq.s32.totalorder %s4587_s4, 0 }
  0x4a   : > { %p3461_p0 = por %p4441_p11, %p72_p9  ;;  %p78_p2 = scmp.ne.s32.totalorder %s3191_s27, %s3187_s26 }
  0x4b   : > { %s4591_s6 = smov (%p50_p12, %s4589_s6), 0  ;;  %p4479_p4 = scmp.eq.s32.totalorder %s3400_s11, 0 }
  0x4c   : > { %4478 = sst [smem:[#allocation38_spill]] %s4591_s6  ;;  %s3477_s5 = ssub.s32 %s3215_s14, %s4587_s4 }
  0x4d   : > { %p3471_p1 = por %p4479_p4, %p78_p2  ;;  %p57_p3 = scmp.eq.s32.totalorder %s4591_s6, 0 }
  0x4e   : > { %s89_s10 = ssub.s32 %s3211_s13, %s4583_s12  ;;  %s184_s26 = ssub.s32 %s3219_s15, %s4591_s6 }
  0x4f   : > { %s4480_s30 = scalar_select %p3471_p1, 1, 0 }
  0x50   : > { %s3483_s17 = sor.u32 %s89_s10, %s3477_s5  ;;  %p59_p6 = pnand %p58_p13, %p57_p3 }
  0x51   : > { %4481 = sst [smem:[#allocation39_spill]] %s4480_s30  ;;  %p3488_p9 = scmp.eq.s32.totalorder %s184_s26, 0 }
  0x52   : > { %p4440_p10 = scmp.lt.s32.totalorder %s3223_s16, 12  ;;  %s4443_s30 = sand.u32 1, %s3223_s16  }
  0x53   : > { %s4482_s9 = scalar_select %p3488_p9, 1, 0 }
  0x54   : > { %s2048_s4 = scalar_select %p59_p6, 0, %s4583_s12 }
  0x55   : > { %s399_s27 = sand.u32 1, %s3195_s28   ;;  %s2098_s10 = sshll.u32 %s2047_s8, 11 }
  0x56   : > { %s62_s18 = ssub.s32 %s2047_s8, %s2048_s4  ;;  %s2053_s19 = sshll.u32 %s399_s27, 7 }
  0x57   : > { %p63_p12 = scmp.eq.s32.totalorder %s62_s18, 0  ;;  %s4483_s2 = sadd.s32 1, %s3195_s28 }
  0x58   : > { %s4485_s0 = sld [smem:[#allocation41_spill]]  ;;  %s401_s26 = scalar_lea.vmem [#allocation6], %s2053_s19 }
  0x59   : > { %s3499_s20 = scalar_select %p63_p12, %s3195_s28, %s4483_s2  }
  0x5a   : > { %s413_s12 = sshll.u32 %s401_s26, 4  ;;  %p3512_p13 = pnand %p4440_p10, %p3461_p0  ;;  %s3506_s12 = int_to_ptr.vmem [resolvable:$true] %s413_s12 }
  0x5b   : > { %4484 = sst [smem:[#allocation40_spill]] %s3499_s20  ;;  %s3518_s2 = scalar_lea.sflag [#allocation7], %s4443_s30 }
  0x5c   : > { %p2873_p4 = pneg %p3512_p13 }
  0x5e   : > { %s3504_s21 = scalar_lea.hbm %s4485_s0, %s2098_s10  ;;  %s2876_s4 = scalar_lea.hbm %s4485_s0, 4096 }
  0x5f   : > { %s2871_s27 = scalar_lea.hbm %s3504_s21, 2048  ;;  %p2877_p0 = scmp.lt.u32.totalorder %s3504_s21, %s4485_s0 }
  0x60   : > { %p2872_p2 = scmp.ne.s32.totalorder %s3504_s21, %s2871_s27  ;;  %p2878_p12 = scmp.lt.u32.totalorder %s2876_s4, %s2871_s27 }
  0x61   : > { %p2880_p10 = scmp.lt.u32.totalorder %s2871_s27, %s3504_s21 }
  0x62   : > { %p2874_p3 = pnand %p2873_p4, %p2872_p2  ;;  %p2879_p7 = por %p2878_p12, %p2877_p0 }
  0x64   : > { %p2875_p6 = pneg %p2874_p3  ;;  %p2881_p11 = por %p2880_p10, %p2879_p7 }
  0x66   : > { %p2882_p8 = pnand %p2881_p11, %p2875_p6 }
  0x68   : > { %2885 = shalt.err (!%p2882_p8)
}
  0x69   : > { %s2886_s29 = scalar_lea.vmem %s3506_s12, 2048  ;;  %s3228_s10 = smov [#allocation6]  }
  0x6a   : > { %p2887_p2 = scmp.ne.s32.totalorder %s3506_s12, %s2886_s29  ;;  %s2891_s26 = sshll.u32 %s3228_s10, 4  ;;  %s2892_s26 = int_to_ptr.vmem [resolvable:$false] %s2891_s26 }
  0x6b   : > { %s2893_s19 = scalar_lea.vmem %s2892_s26, 4096  ;;  %p2894_p9 = scmp.lt.s32.totalorder %s3506_s12, %s2892_s26 }
  0x6c   : > { %p2889_p3 = pnand %p2887_p2, %p2873_p4  ;;  %p2895_p0 = scmp.lt.s32.totalorder %s2893_s19, %s2886_s29 }
  0x6e   : > { %p2890_p1 = pneg %p2889_p3  ;;  %p2896_p12 = por %p2895_p0, %p2894_p9 }
  0x70   : > { %p2897_p7 = pnand %p2896_p12, %p2890_p1 }
  0x72   : > { %2900 = shalt.err (!%p2897_p7)
}
  0x73   : > { %s4487_s27 = smov 8   ;;  %s4488_s15 = smov 128  }
  0x74   : > { %2619 = dma.hbm_to_vmem [thread:$0]  (!%p3512_p13), %s3504_s21, 2048, %s3506_s12, %s3518_s2, %s4488_s15, %s4488_s15, %s4487_s27  }
  0x75   : > { %s93_s18 = sadd.s32 1, %s3183_s25  ;;  %p100_p11 = scmp.ne.s32.totalorder %s3183_s25, %s3179_s24 }
  0x76   : > { %p4489_p1 = scmp.eq.s32.totalorder %s3483_s17, 0  ;;  %p4490_p8 = scmp.eq.s32.totalorder %s3223_s16, 0 }
  0x77   : > { %p106_p10 = scmp.ne.s32.totalorder %s3179_s24, %s3175_s23  ;;  %s425_s6 = sand.u32 1, %s3183_s25  }
  0x78   : > { %s3555_s4 = scalar_select %p4489_p1, %s3183_s25, %s93_s18  }
  0x79   : > { %p102_p9 = por %p100_p11, %p4490_p8  ;;  %s2099_s8 = sshll.u32 %s3215_s14, 5 }
  0x7a   : > { %p4491_p4 = scmp.eq.s32.totalorder %s3400_s11, 0  ;;  %s2057_s10 = sshll.u32 %s425_s6, 6 }
  0x7b   : > { %s433_s26 = sadd.s32 %s3211_s13, %s2099_s8  ;;  %s427_s12 = scalar_lea.vmem [#allocation9], %s2057_s10 }
  0x7c   : > { %p3565_p6 = por %p106_p10, %p4491_p4  ;;  %s2060_s21 = sshll.u32 %s433_s26, 6 }
  0x7d   : > { %s436_s19 = sshll.u32 %s427_s12, 4  ;;  %s4493_s1 = sld [smem:[#allocation42_spill]]  ;;  %s3575_s19 = int_to_ptr.vmem [resolvable:$true] %s436_s19 }
  0x7e   : > { %s4492_s29 = scalar_select %p3565_p6, 1, 0 }
  0x7f   : > { %p4494_p13 = scmp.lt.s32.totalorder %s3223_s16, 12  ;;  %s4496_s18 = sand.u32 1, %s3223_s16  }
  0x80   : > { %s3585_s6 = scalar_lea.sflag [#allocation10], %s4496_s18 }
  0x81   : > { %p3579_p2 = pnand %p4494_p13, %p102_p9 }
  0x83   : > { %s3573_s17 = scalar_lea.hbm %s4493_s1, %s2060_s21  ;;  %p2903_p0 = pneg %p3579_p2 }
  0x84   : > { %s2901_s8 = scalar_lea.hbm %s3573_s17, 1024  ;;  %s2906_s10 = scalar_lea.hbm %s4493_s1, 4096 }
  0x85   : > { %p2902_p3 = scmp.ne.s32.totalorder %s3573_s17, %s2901_s8  ;;  %p2907_p11 = scmp.lt.u32.totalorder %s3573_s17, %s4493_s1 }
  0x86   : > { %p2908_p1 = scmp.lt.u32.totalorder %s2906_s10, %s2901_s8  ;;  %p2910_p9 = scmp.lt.u32.totalorder %s2901_s8, %s3573_s17 }
  0x87   : > { %p2904_p12 = pnand %p2903_p0, %p2902_p3 }
  0x88   : > { %p2909_p8 = por %p2908_p1, %p2907_p11 }
  0x89   : > { %p2905_p7 = pneg %p2904_p12 }
  0x8a   : > { %p2911_p10 = por %p2910_p9, %p2909_p8 }
  0x8c   : > { %p2912_p4 = pnand %p2911_p10, %p2905_p7 }
  0x8e   : > { %2915 = shalt.err (!%p2912_p4)
}
  0x8f   : > { %s2916_s12 = scalar_lea.vmem %s3575_s19, 1024  ;;  %s3229_s18 = smov [#allocation9]  }
  0x90   : > { %p2917_p13 = scmp.ne.s32.totalorder %s3575_s19, %s2916_s12  ;;  %s2921_s0 = sshll.u32 %s3229_s18, 4  ;;  %s2922_s0 = int_to_ptr.vmem [resolvable:$false] %s2921_s0 }
  0x91   : > { %s2923_s30 = scalar_lea.vmem %s2922_s0, 2048  ;;  %p2924_p6 = scmp.lt.s32.totalorder %s3575_s19, %s2922_s0 }
  0x92   : > { %p2919_p3 = pnand %p2917_p13, %p2903_p0  ;;  %p2925_p11 = scmp.lt.s32.totalorder %s2923_s30, %s2916_s12 }
  0x94   : > { %p2920_p12 = pneg %p2919_p3  ;;  %p2926_p1 = por %p2925_p11, %p2924_p6 }
  0x96   : > { %p2927_p8 = pnand %p2926_p1, %p2920_p12 }
  0x98   : > { %2930 = shalt.err (!%p2927_p8)
}
  0x99   : > { %s3230_s8 = smov 64   ;;  %s3231_s10 = smov 4  }
  0x9a   : > { %2622 = dma.hbm_to_vmem [thread:$0]  (!%p3579_p2), %s3573_s17, 1024, %s3575_s19, %s3585_s6, %s4488_s15, %s3230_s8, %s3231_s10  }
  0x9b   : > { %s3232_s26 = smov [#allocation12]   ;;  %s4497_s3 = sld [smem:[#allocation44_spill]] }
  0x9c   : > { %s364_s21 = sshll.u32 %s3232_s26, 4  ;;  %p4498_p0 = pneg %p3413_p5  ;;  %s365_s21 = int_to_ptr.vmem [resolvable:$true] %s364_s21 }
  0xa1   : > { %s2931_s12 = scalar_lea.hbm %s4497_s3, 2048 }
  0xa2   : > { %p2932_p6 = scmp.ne.s32.totalorder %s4497_s3, %s2931_s12  ;;  %p2938_p10 = scmp.lt.u32.totalorder %s2931_s12, %s4497_s3 }
  0xa4   : > { %p2934_p7 = pnand %p2932_p6, %p4498_p0 }
  0xa6   : > { %p2935_p9 = pneg %p2934_p7 }
  0xa8   : > { %p2940_p2 = pnand %p2938_p10, %p2935_p9 }
  0xaa   : > { %2943 = shalt.err (!%p2940_p2)
}
  0xab   : > { %s2944_s19 = scalar_lea.vmem %s365_s21, 2048  ;;  %p4499_p13 = pmov %p4498_p0 }
  0xac   : > { %p2945_p4 = scmp.ne.s32.totalorder %s365_s21, %s2944_s19  ;;  %p2952_p11 = scmp.lt.s32.totalorder %s365_s21, %s365_s21 }
  0xad   : > { %p2953_p1 = scmp.lt.s32.totalorder %s2944_s19, %s2944_s19 }
  0xae   : > { %p2947_p3 = pnand %p2945_p4, %p4499_p13 }
  0xaf   : > { %p2954_p8 = por %p2953_p1, %p2952_p11 }
  0xb0   : > { %p2948_p12 = pneg %p2947_p3 }
  0xb2   : > { %p2955_p0 = pnand %p2954_p8, %p2948_p12 }
  0xb4   : > { %2958 = shalt.err (!%p2955_p0)
}
  0xb5   : > { %s4500_s13 = sld [smem:[#allocation28_spill]]  ;;  %s4501_s17 = sld [smem:[#allocation27_spill]] }
  0xb6   : > { %2612 = dma.hbm_to_vmem [thread:$0]  (!%p3413_p5), %s4497_s3, 2048, %s365_s21, [#allocation13], %s4488_s15, %s4488_s15, %s4487_s27  }
  0xb7   : > { %p117_p6 = scmp.eq.s32.totalorder %s3477_s5, 0  ;;  %s119_s7 = sadd.s32 1, %s3171_s22 }
  0xb8   : > { %p4502_p9 = scmp.eq.s32.totalorder %s3223_s16, 0  ;;  %s448_s8 = sand.u32 1, %s3171_s22  }
  0xb9   : > { %s3642_s23 = scalar_select %p117_p6, %s3171_s22, %s119_s7  }
  0xba   : > { %s2062_s10 = sshll.u32 %s3215_s14, 7  ;;  %p4503_p4 = scmp.eq.s32.totalorder %s3400_s11, 0 }
  0xbb   : > { %p126_p7 = scmp.ne.s32.totalorder %s3171_s22, %s4500_s13  ;;  %p132_p2 = scmp.ne.s32.totalorder %s4500_s13, %s4501_s17 }
  0xbc   : > { %s2061_s18 = sshll.u32 %s448_s8, 3  ;;  %s4505_s30 = sld [smem:[#allocation43_spill]] }
  0xbd   : > { %p128_p10 = por %p126_p7, %p4502_p9  ;;  %p3652_p13 = por %p132_p2, %p4503_p4 }
  0xbe   : > { %s450_s5 = scalar_lea.vmem [#allocation11], %s2061_s18  ;;  %p4507_p5 = scmp.lt.s32.totalorder %s3223_s16, 12 }
  0xbf   : > { %s4504_s26 = scalar_select %p3652_p13, 1, 0 }
  0xc0   : > { %s457_s19 = sshll.u32 %s450_s5, 4  ;;  %p3663_p3 = pnand %p4507_p5, %p128_p10  ;;  %s458_s19 = int_to_ptr.vmem [resolvable:$true] %s457_s19 }
  0xc2   : > { %s4506_s1 = smov %s4505_s30  ;;  %s3659_s21 = scalar_lea.hbm %s4505_s30, %s2062_s10 }
  0xc3   : > { %s2959_s13 = scalar_lea.hbm %s3659_s21, 128  ;;  %p2961_p11 = pneg %p3663_p3 }
  0xc4   : > { %p2960_p12 = scmp.ne.s32.totalorder %s3659_s21, %s2959_s13  ;;  %s2964_s8 = scalar_lea.hbm %s4506_s1, 256 }
  0xc5   : > { %p2965_p0 = scmp.lt.u32.totalorder %s3659_s21, %s4506_s1  ;;  %p2966_p6 = scmp.lt.u32.totalorder %s2964_s8, %s2959_s13 }
  0xc6   : > { %p2962_p1 = pnand %p2961_p11, %p2960_p12  ;;  %p2968_p9 = scmp.lt.u32.totalorder %s2959_s13, %s3659_s21 }
  0xc7   : > { %p2967_p7 = por %p2966_p6, %p2965_p0 }
  0xc8   : > { %p2963_p8 = pneg %p2962_p1 }
  0xc9   : > { %p2969_p10 = por %p2968_p9, %p2967_p7 }
  0xcb   : > { %p2970_p2 = pnand %p2969_p10, %p2963_p8 }
  0xcd   : > { %2973 = shalt.err (!%p2970_p2)
}
  0xce   : > { %s2974_s12 = scalar_lea.vmem %s458_s19, 128  ;;  %s3233_s0 = smov [#allocation11]  }
  0xcf   : > { %p2975_p4 = scmp.ne.s32.totalorder %s458_s19, %s2974_s12  ;;  %s2979_s30 = sshll.u32 %s3233_s0, 4  ;;  %s2980_s30 = int_to_ptr.vmem [resolvable:$false] %s2979_s30 }
  0xd0   : > { %s2981_s5 = scalar_lea.vmem %s2980_s30, 256  ;;  %p2982_p1 = scmp.lt.s32.totalorder %s458_s19, %s2980_s30 }
  0xd1   : > { %p2977_p5 = pnand %p2975_p4, %p2961_p11  ;;  %p2983_p13 = scmp.lt.s32.totalorder %s2981_s5, %s2974_s12 }
  0xd3   : > { %p2978_p12 = pneg %p2977_p5  ;;  %p2984_p0 = por %p2983_p13, %p2982_p1 }
  0xd5   : > { %p2985_p6 = pnand %p2984_p0, %p2978_p12 }
  0xd7   : > { %2988 = shalt.err (!%p2985_p6)
}
  0xd8   : > { %s4509_s13 = sld [smem:[#allocation26_spill]]  ;;  %s4510_s17 = sld [smem:[#allocation25_spill]] }
  0xd9   : > { %s4511_s7 = sld [smem:[#allocation24_spill]]  ;;  %s4512_s8 = sld [smem:[#allocation34_spill]] }
  0xda   : > { %2625 = dma.hbm_to_vmem [thread:$0]  (!%p3663_p3), %s3659_s21, 128, %s458_s19, %s3585_s6  }
  0xdb   : > { %p4513_p11 = scmp.ne.s32.totalorder %s4482_s9, 0  ;;  %p4514_p8 = scmp.eq.s32.totalorder %s3223_s16, 0 }
  0xdc   : > { %p4515_p10 = scmp.eq.s32.totalorder %s3400_s11, 0  ;;  %s4517_s3 = sld [smem:[#allocation46_spill]] }
  0xdd   : > { %p4518_p3 = scmp.lt.s32.totalorder %s3223_s16, 12 }
  0xde   : > { %s187_s10 = sadd.s32 1, %s4509_s13  ;;  %p194_p13 = scmp.ne.s32.totalorder %s4509_s13, %s4510_s17 }
  0xdf   : > { %s3695_s18 = scalar_select %p4513_p11, %s4509_s13, %s187_s10  }
  0xe0   : > { %p196_p7 = por %p194_p13, %p4514_p8  ;;  %p200_p9 = scmp.ne.s32.totalorder %s4510_s17, %s4511_s7 }
  0xe1   : > { %s466_s20 = sand.u32 1, %s4509_s13   ;;  %s2100_s12 = sshll.u32 %s4512_s8, 11 }
  0xe2   : > { %p3705_p2 = por %p200_p9, %p4515_p10  ;;  %s2063_s30 = sshll.u32 %s466_s20, 7 }
  0xe3   : > { %s3712_s6 = scalar_lea.hbm %s4517_s3, %s2100_s12  ;;  %s468_s9 = scalar_lea.vmem [#allocation14], %s2063_s30 }
  0xe4   : > { %s475_s21 = sshll.u32 %s468_s9, 4  ;;  %p3716_p4 = pnand %p4518_p3, %p196_p7  ;;  %s3720_s21 = int_to_ptr.vmem [resolvable:$true] %s475_s21 }
  0xe5   : > { %s2989_s13 = scalar_lea.hbm %s3712_s6, 2048  ;;  %s2994_s7 = scalar_lea.hbm %s4517_s3, 6144 }
  0xe6   : > { %p2990_p5 = scmp.ne.s32.totalorder %s3712_s6, %s2989_s13  ;;  %p2991_p12 = pneg %p3716_p4 }
  0xe7   : > { %p2995_p6 = scmp.lt.u32.totalorder %s3712_s6, %s4517_s3  ;;  %p2996_p13 = scmp.lt.u32.totalorder %s2994_s7, %s2989_s13 }
  0xe8   : > { %p2992_p1 = pnand %p2991_p12, %p2990_p5  ;;  %p2998_p8 = scmp.lt.u32.totalorder %s2989_s13, %s3712_s6 }
  0xe9   : > { %p2997_p11 = por %p2996_p13, %p2995_p6 }
  0xea   : > { %p2993_p0 = pneg %p2992_p1 }
  0xeb   : > { %p2999_p7 = por %p2998_p8, %p2997_p11 }
  0xed   : > { %p3000_p9 = pnand %p2999_p7, %p2993_p0 }
  0xef   : > { %3003 = shalt.err (!%p3000_p9)
}
  0xf0   : > { %s3004_s20 = scalar_lea.vmem %s3720_s21, 2048  ;;  %s3234_s12 = smov [#allocation14]  }
  0xf1   : > { %p3005_p10 = scmp.ne.s32.totalorder %s3720_s21, %s3004_s20  ;;  %s3009_s30 = sshll.u32 %s3234_s12, 4  ;;  %s3010_s30 = int_to_ptr.vmem [resolvable:$false] %s3009_s30 }
  0xf2   : > { %s3011_s5 = scalar_lea.vmem %s3010_s30, 4096  ;;  %p3012_p1 = scmp.lt.s32.totalorder %s3720_s21, %s3010_s30 }
  0xf3   : > { %p3007_p3 = pnand %p3005_p10, %p2991_p12  ;;  %p3013_p6 = scmp.lt.s32.totalorder %s3011_s5, %s3004_s20 }
  0xf5   : > { %p3008_p5 = pneg %p3007_p3  ;;  %p3014_p13 = por %p3013_p6, %p3012_p1 }
  0xf7   : > { %p3015_p11 = pnand %p3014_p13, %p3008_p5 }
  0xf9   : > { %3018 = shalt.err (!%p3015_p11)
}
  0xfa   : > { %2628 = dma.hbm_to_vmem [thread:$0]  (!%p3716_p4), %s3712_s6, 2048, %s3720_s21, %s3518_s2, %s4488_s15, %s4488_s15, %s4487_s27  }
  0xfb   : > { %s4520_s9 = sld [smem:[#allocation35_spill]] }
 0x101   : > { %p4521_p12 = scmp.ne.s32.totalorder %s4520_s9, 0 }
 0x102   : > { %s4522_s13 = sld [smem:[#allocation29_spill]] (!%p4521_p12)  ;;  %s4523_s1 = sld [smem:[#allocation39_spill]] (!%p4521_p12) }
 0x103   : > { %505 = sbr.rel (%p4521_p12) target bundleno = 1895 (0x767), region = 64  ;;  %s507_s17 = sand.u32 (!%p4521_p12), 1, %s3400_s11  }
 0x104   : > { %s508_s10 = scalar_lea.sflag (!%p4521_p12), [#allocation7], %s507_s17 }
 0x108   : > { %s509_s7 = sand.u32 (!%p4521_p12), 1, %s4522_s13   ;;  %p4524_p0 = scmp.ne.s32.totalorder (!%p4521_p12), %s4523_s1, 0 }
 0x109   : > { %s2067_s8 = sshll.u32 (!%p4521_p12), %s509_s7, 7 }
 0x10a   : > { %s3755_s20 = scalar_lea.vmem [#allocation6], %s2067_s8 }
 0x10b   : > { %3122 = dma.done.wait (%p4524_p0), %s508_s10, 2048  }
 0x10c   : > { %3124 = vsyncadd (%p4524_p0), %s508_s10, 4294965248  ;;  %s518_s2 = sand.u32 1, %s3179_s24   ;;  %s517_s15 = scalar_lea.sflag [#allocation10], %s507_s17 }
 0x10d   : > { %s2068_s27 = sshll.u32 %s518_s2, 6  ;;  %p4525_p4 = scmp.ne.s32.totalorder %s4492_s29, 0 }
 0x10e   : > { %s3762_s6 = scalar_lea.vmem [#allocation9], %s2068_s27 }
 0x10f   : > { %3126 = dma.done.wait (%p4525_p4), %s517_s15, 1024  }
 0x110   : > { %3128 = vsyncadd (%p4525_p4), %s517_s15, 4294966272  ;;  %s4526_s21 = sld [smem:[#allocation28_spill]]  ;;  %p4527_p8 = scmp.ne.s32.totalorder %s4504_s26, 0 }
 0x116   : > { %s527_s19 = sand.u32 1, %s4526_s21  }
 0x117   : > { %s3769_s12 = sshll.u32 %s527_s19, 3 }
 0x118   : > { %3130 = dma.done.wait (%p4527_p8), %s517_s15, 128  }
 0x119   : > { %3132 = vsyncadd (%p4527_p8), %s517_s15, 4294967168  ;;  %p4528_p7 = scmp.eq.s32.totalorder %s3400_s11, 0 }
 0x11b   : > { %3134 = dma.done.wait (%p4528_p7), [#allocation13], 2048   ;;  %p4529_p9 = pmov %p4528_p7 }
 0x11c   : > { %s4530_s29 = sld [smem:[#allocation25_spill]] }
 0x11d   : > { %3136 = vsyncadd (%p4529_p9), [#allocation13], 4294965248 }
 0x122   : > { %s540_s5 = sand.u32 1, %s4530_s29  }
 0x123   : > { %s2071_s9 = sshll.u32 %s540_s5, 7 }
 0x124   : > { %s3781_s13 = scalar_lea.vmem [#allocation14], %s2071_s9 }
 0x125   : > { %3138 = dma.done.wait (%p3705_p2), %s508_s10, 2048  }
 0x126   : > { %3140 = vsyncadd (%p3705_p2), %s508_s10, 4294965248  ;;  %p4531_p10 = pmov %p4528_p7 }
 0x127   : > { %p4532_p3 = pmov %p4528_p7 }
 0x128   : > { %3142 = dma.done.wait (%p4531_p10), [#allocation10], 2048  }
 0x129   : > { %3144 = vsyncadd (%p4532_p3), [#allocation10], 4294965248  ;;  %s4533_s26 = sld [smem:[#allocation32_spill]]  ;;  %s4534_s1 = sld [smem:[#allocation30_spill]] }
 0x12a   : > { %s4535_s17 = sld [smem:[#allocation31_spill]]  ;;  %s4536_s2 = sld [smem:[#allocation47_spill]] }
 0x12b   : > { %s4537_s19 = sld [smem:[#allocation48_spill]]  ;;  %s4538_s30 = sld [smem:[#allocation49_spill]] }
 0x12f   : > { %p611_p5 = scmp.lt.s32.totalorder %s4533_s26, 2  ;;  %s3793_s7 = sshll.u32 %s4534_s1, 7 }
 0x130   : > { %p623_p1 = scmp.eq.s32.totalorder %s4533_s26, 0  ;;  %p624_p2 = scmp.eq.s32.totalorder %s4535_s17, 0 }
 0x131   : > { %s4593_s26 = smov (!%p611_p5, %s4533_s26), 2  ;;  %p627_p6 = scmp.eq.s32.totalorder %s4534_s1, 0 }
 0x132   : > { %s613_s27 = scalar_lea.vmem %s4536_s2, %s4593_s26  ;;  %s616_s29 = scalar_lea.vmem %s4537_s19, %s4593_s26 }
 0x133   : > { %s619_s8 = scalar_lea.vmem %s4538_s30, %s4593_s26  ;;  %p625_p13 = pnand %p624_p2, %p623_p1 }
 0x135   : > { %p626_p11 = pneg %p625_p13 }
 0x137   : > { %p628_p12 = pnand %p627_p6, %p626_p11 }
 0x138   : > { %v3235_v0 = vmov (!%p628_p12), 0.0  }
 0x139   : > { %631 = sbr.rel (%p628_p12) target bundleno = 320 (0x140), region = 92  ;;  %632 = vst [vmem:[#allocation5] sm:$0xff] (!%p628_p12), %v3235_v0  ;;  %633 = vst [vmem:[#allocation16] sm:$0xff] (!%p628_p12), %v3235_v0 }
 0x140 PF: > { %635 = sbr.rel (%p625_p13) target bundleno = 585 (0x249), region = 96  ;;  %v652_v1 = vld [vmem:[#allocation12] sm:$0xff] (!%p625_p13)  ;;  %v653_v2 = vld [vmem:[#allocation12 + $0x8] sm:$0xff] (!%p625_p13)  ;;  %v654_v3 = vld [vmem:[#allocation12 + $0x10] sm:$0xff] (!%p625_p13)  ;;  %s4539_s17 = sld [smem:[#allocation45_spill]] (!%p625_p13) }
 0x141   : > { %v2429_v4 = vpack.c.bf16 (!%p625_p13), %v653_v2, %v652_v1  ;;  %v655_v5 = vld [vmem:[#allocation12 + $0x18] sm:$0xff] (!%p625_p13)  ;;  %v656_v7 = vld [vmem:[#allocation12 + $0x20] sm:$0xff] (!%p625_p13)  ;;  %v657_v8 = vld [vmem:[#allocation12 + $0x28] sm:$0xff] (!%p625_p13) }
 0x142   : > { %v2433_v6 = vpack.c.bf16 (!%p625_p13), %v655_v5, %v654_v3  ;;  %v2437_v9 = vpack.c.bf16 (!%p625_p13), %v657_v8, %v656_v7  ;;  %v636_v10 = vld [vmem:[%s3755_s20] sm:$0xff] (!%p625_p13)  ;;  %v659_v13 = vld [vmem:[#allocation12 + $0x38] sm:$0xff] (!%p625_p13)  ;;  %v660_v15 = vld [vmem:[#allocation12 + $0x40] sm:$0xff] (!%p625_p13) }
 0x143   : > { %2430 = vmatprep.subr.bf16.mxu0 (!%p625_p13), %v2429_v4  ;;  %2541 = vmatprep.subr.bf16.mxu1 (!%p625_p13), %v2429_v4  ;;  %v644_v11 = vld [vmem:[%s3755_s20 + $0x40] sm:$0xff] (!%p625_p13)  ;;  %v661_v16 = vld [vmem:[#allocation12 + $0x48] sm:$0xff] (!%p625_p13)  ;;  %v663_v19 = vld [vmem:[#allocation12 + $0x58] sm:$0xff] (!%p625_p13) }
 0x144   : > { %2432 = vmatpush3.bf16.msra.mxu0 (!%p625_p13), %v2429_v4  ;;  %2549 = vmatpush3.bf16.msra.mxu1 (!%p625_p13), %v2429_v4  ;;  %v658_v12 = vld [vmem:[#allocation12 + $0x30] sm:$0xff] (!%p625_p13)  ;;  %v2445_v17 = vpack.c.bf16 (!%p625_p13), %v661_v16, %v660_v15  ;;  %v664_v21 = vld [vmem:[#allocation12 + $0x60] sm:$0xff] (!%p625_p13)  ;;  %v665_v22 = vld [vmem:[#allocation12 + $0x68] sm:$0xff] (!%p625_p13) }
 0x145   : > { %2434 = vmatprep.subr.bf16.mxu0 (!%p625_p13), %v2433_v6  ;;  %2542 = vmatprep.subr.bf16.mxu1 (!%p625_p13), %v2433_v6  ;;  %v2441_v14 = vpack.c.bf16 (!%p625_p13), %v659_v13, %v658_v12  ;;  %v662_v18 = vld [vmem:[#allocation12 + $0x50] sm:$0xff] (!%p625_p13)  ;;  %v2453_v23 = vpack.c.bf16 (!%p625_p13), %v665_v22, %v664_v21  ;;  %v667_v25 = vld [vmem:[#allocation12 + $0x78] sm:$0xff] (!%p625_p13)  ;;  %v638_v29 = vld [vmem:[%s3755_s20 + $0x10] sm:$0xff] (!%p625_p13) }
 0x146   : > { %2247 = vmatprep.mubr.f32.mxu0 (!%p625_p13), %v636_v10  ;;  %2259 = vmatprep.mubr.f32.mxu1 (!%p625_p13), %v644_v11  ;;  %v2449_v20 = vpack.c.bf16 (!%p625_p13), %v663_v19, %v662_v18  ;;  %v666_v24 = vld [vmem:[#allocation12 + $0x70] sm:$0xff] (!%p625_p13)  ;;  %v637_v27 = vld [vmem:[%s3755_s20 + $0x8] sm:$0xff] (!%p625_p13)  ;;  %v646_v30 = vld [vmem:[%s3755_s20 + $0x50] sm:$0xff] (!%p625_p13) }
 0x147   : > { %v2457_v26 = vpack.c.bf16 %v667_v25, %v666_v24  ;;  %v645_v28 = vld [vmem:[%s3755_s20 + $0x48] sm:$0xff]  ;;  %v639_v31 = vld [vmem:[%s3755_s20 + $0x18] sm:$0xff]  ;;  %v640_v33 = vld [vmem:[%s3755_s20 + $0x20] sm:$0xff] }
 0x148   : > { %2436 = vmatpush3.bf16.msra.mxu0 %v2433_v6  ;;  %2550 = vmatpush3.bf16.msra.mxu1 %v2433_v6  ;;  %v647_v32 = vld [vmem:[%s3755_s20 + $0x58] sm:$0xff]  ;;  %v648_v34 = vld [vmem:[%s3755_s20 + $0x60] sm:$0xff]  ;;  %v641_v35 = vld [vmem:[%s3755_s20 + $0x28] sm:$0xff] }
 0x149   : > { %2438 = vmatprep.subr.bf16.mxu0 %v2437_v9  ;;  %2543 = vmatprep.subr.bf16.mxu1 %v2437_v9  ;;  %v649_v36 = vld [vmem:[%s3755_s20 + $0x68] sm:$0xff]  ;;  %v642_v37 = vld [vmem:[%s3755_s20 + $0x30] sm:$0xff]  ;;  %v643_v39 = vld [vmem:[%s3755_s20 + $0x38] sm:$0xff] }
 0x14a   : > { %v650_v38 = vld [vmem:[%s3755_s20 + $0x70] sm:$0xff]  ;;  %v651_v40 = vld [vmem:[%s3755_s20 + $0x78] sm:$0xff]  ;;  %s3834_s20 = scalar_lea.vmem [#allocation2], %s3793_s7 }
 0x14b   : > { %v2075_v41 = vld [vmem:[%s4539_s17] ss:$0 sm:$0xff] }
 0x14c   : > { %2440 = vmatpush3.bf16.msra.mxu0 %v2437_v9  ;;  %2551 = vmatpush3.bf16.msra.mxu1 %v2437_v9 }
 0x14d   : > { %2442 = vmatprep.subr.bf16.mxu0 %v2441_v14  ;;  %2544 = vmatprep.subr.bf16.mxu1 %v2441_v14 }
 0x150   : > { %2444 = vmatpush3.bf16.msra.mxu0 %v2441_v14  ;;  %2552 = vmatpush3.bf16.msra.mxu1 %v2441_v14 }
 0x151   : > { %2446 = vmatprep.subr.bf16.mxu0 %v2445_v17  ;;  %2545 = vmatprep.subr.bf16.mxu1 %v2445_v17 }
 0x154   : > { %2448 = vmatpush3.bf16.msra.mxu0 %v2445_v17  ;;  %2553 = vmatpush3.bf16.msra.mxu1 %v2445_v17 }
 0x155   : > { %2450 = vmatprep.subr.bf16.mxu0 %v2449_v20  ;;  %2546 = vmatprep.subr.bf16.mxu1 %v2449_v20 }
 0x158   : > { %2452 = vmatpush3.bf16.msra.mxu0 %v2449_v20  ;;  %2554 = vmatpush3.bf16.msra.mxu1 %v2449_v20 }
 0x159   : > { %2454 = vmatprep.subr.bf16.mxu0 %v2453_v23  ;;  %2547 = vmatprep.subr.bf16.mxu1 %v2453_v23 }
 0x15c   : > { %2456 = vmatpush3.bf16.msra.mxu0 %v2453_v23  ;;  %2555 = vmatpush3.bf16.msra.mxu1 %v2453_v23 }
 0x15d   : > { %2458 = vmatprep.subr.bf16.mxu0 %v2457_v26  ;;  %2548 = vmatprep.subr.bf16.mxu1 %v2457_v26 }
 0x160   : > { %2460 = vmatpush3.bf16.msra.mxu0 %v2457_v26  ;;  %2556 = vmatpush3.bf16.msra.mxu1 %v2457_v26 }
 0x163   : > { %2248 = vmatmul.mubr.f32.vlgmr.msra.gmra.mrb[0].mxu0 %v637_v27  ;;  %2260 = vmatmul.mubr.f32.vlgmr.msra.gmra.mrb[0].mxu1 %v645_v28 }
 0x164   : > { %2250 = vmatprep.mubr.f32.mxu0 %v638_v29  ;;  %2262 = vmatprep.mubr.f32.mxu1 %v646_v30 }
 0x167   : > { %2251 = vmatmul.mubr.f32.gmra.mrb[2].mxu0 %v639_v31  ;;  %2263 = vmatmul.mubr.f32.gmra.mrb[2].mxu1 %v647_v32 }
 0x168   : > { %2253 = vmatprep.mubr.f32.mxu0 %v640_v33  ;;  %2265 = vmatprep.mubr.f32.mxu1 %v648_v34 }
 0x16b   : > { %2254 = vmatmul.mubr.f32.gmra.mrb[4].mxu0 %v641_v35  ;;  %2266 = vmatmul.mubr.f32.gmra.mrb[4].mxu1 %v649_v36 }
 0x16c   : > { %2256 = vmatprep.mubr.f32.mxu0 %v642_v37  ;;  %2268 = vmatprep.mubr.f32.mxu1 %v650_v38 }
 0x16f   : > { %2257 = vmatmul.mubr.f32.gmra.mrb[6].mxu0 %v643_v39  ;;  %2269 = vmatmul.mubr.f32.gmra.mrb[6].mxu1 %v651_v40 }
 0x236   : > { %v2249_v42 = vpop.f32.mrb[0].mxu0  ;;  %v2261_v43 = vpop.f32.mrb[0].mxu1 }
 0x237   : > { %v747_v44 = vadd.f32 %v2249_v42, %v2075_v41  ;;  %v787_v45 = vadd.f32 %v2261_v43, %v2075_v41  ;;  %v741_v46 = vpop.f32.mrb[1].mxu0  ;;  %v781_v47 = vpop.f32.mrb[1].mxu1 }
 0x238   : > { %v742_v48 = vadd.f32 %v2075_v41, %v741_v46  ;;  %v782_v49 = vadd.f32 %v2075_v41, %v781_v47 }
 0x239   : > { %v821_v50 = vmax.f32 %v747_v44, 0.0  ;;  %v829_v51 = vmax.f32 %v787_v45, 0.0 }
 0x23a   : > { %v820_v52 = vmax.f32 %v742_v48, 0.0  ;;  %v828_v53 = vmax.f32 %v782_v49, 0.0  ;;  %v2252_v54 = vpop.f32.mrb[2].mxu0  ;;  %v2264_v55 = vpop.f32.mrb[2].mxu1 }
 0x23b   : > { %838 = vst [vmem:[%s3834_s20 + $0x8] sm:$0xff] %v821_v50  ;;  %846 = vst [vmem:[%s3834_s20 + $0x48] sm:$0xff] %v829_v51  ;;  %v757_v56 = vadd.f32 %v2252_v54, %v2075_v41  ;;  %v797_v57 = vadd.f32 %v2264_v55, %v2075_v41  ;;  %v751_v58 = vpop.f32.mrb[3].mxu0  ;;  %v791_v59 = vpop.f32.mrb[3].mxu1 }
 0x23c   : > { %837 = vst [vmem:[%s3834_s20] sm:$0xff] %v820_v52  ;;  %845 = vst [vmem:[%s3834_s20 + $0x40] sm:$0xff] %v828_v53  ;;  %v752_v60 = vadd.f32 %v2075_v41, %v751_v58  ;;  %v792_v61 = vadd.f32 %v2075_v41, %v791_v59 }
 0x23d   : > { %v823_v62 = vmax.f32 %v757_v56, 0.0  ;;  %v831_v63 = vmax.f32 %v797_v57, 0.0 }
 0x23e   : > { %v822_v0 = vmax.f32 %v752_v60, 0.0  ;;  %v830_v1 = vmax.f32 %v792_v61, 0.0  ;;  %v2255_v2 = vpop.f32.mrb[4].mxu0  ;;  %v2267_v3 = vpop.f32.mrb[4].mxu1 }
 0x23f   : > { %840 = vst [vmem:[%s3834_s20 + $0x18] sm:$0xff] %v823_v62  ;;  %848 = vst [vmem:[%s3834_s20 + $0x58] sm:$0xff] %v831_v63  ;;  %v767_v4 = vadd.f32 %v2255_v2, %v2075_v41  ;;  %v807_v5 = vadd.f32 %v2267_v3, %v2075_v41  ;;  %v761_v6 = vpop.f32.mrb[5].mxu0  ;;  %v801_v7 = vpop.f32.mrb[5].mxu1 }
 0x240   : > { %839 = vst [vmem:[%s3834_s20 + $0x10] sm:$0xff] %v822_v0  ;;  %847 = vst [vmem:[%s3834_s20 + $0x50] sm:$0xff] %v830_v1  ;;  %v762_v8 = vadd.f32 %v2075_v41, %v761_v6  ;;  %v802_v9 = vadd.f32 %v2075_v41, %v801_v7 }
 0x241   : > { %v825_v10 = vmax.f32 %v767_v4, 0.0  ;;  %v833_v11 = vmax.f32 %v807_v5, 0.0 }
 0x242   : > { %v824_v12 = vmax.f32 %v762_v8, 0.0  ;;  %v832_v13 = vmax.f32 %v802_v9, 0.0  ;;  %v2258_v14 = vpop.f32.mrb[6].mxu0  ;;  %v2270_v15 = vpop.f32.mrb[6].mxu1 }
 0x243   : > { %842 = vst [vmem:[%s3834_s20 + $0x28] sm:$0xff] %v825_v10  ;;  %850 = vst [vmem:[%s3834_s20 + $0x68] sm:$0xff] %v833_v11  ;;  %v777_v16 = vadd.f32 %v2258_v14, %v2075_v41  ;;  %v817_v17 = vadd.f32 %v2270_v15, %v2075_v41  ;;  %v771_v18 = vpop.f32.mrb[7].mxu0  ;;  %v811_v19 = vpop.f32.mrb[7].mxu1 }
 0x244   : > { %841 = vst [vmem:[%s3834_s20 + $0x20] sm:$0xff] %v824_v12  ;;  %849 = vst [vmem:[%s3834_s20 + $0x60] sm:$0xff] %v832_v13  ;;  %v772_v20 = vadd.f32 %v2075_v41, %v771_v18  ;;  %v812_v21 = vadd.f32 %v2075_v41, %v811_v19 }
 0x245   : > { %v827_v22 = vmax.f32 %v777_v16, 0.0  ;;  %v835_v23 = vmax.f32 %v817_v17, 0.0 }
 0x246   : > { %v826_v24 = vmax.f32 %v772_v20, 0.0  ;;  %v834_v25 = vmax.f32 %v812_v21, 0.0 }
 0x247   : > { %844 = vst [vmem:[%s3834_s20 + $0x38] sm:$0xff] %v827_v22  ;;  %852 = vst [vmem:[%s3834_s20 + $0x78] sm:$0xff] %v835_v23 }
 0x248   : > { %843 = vst [vmem:[%s3834_s20 + $0x30] sm:$0xff] %v826_v24  ;;  %851 = vst [vmem:[%s3834_s20 + $0x70] sm:$0xff] %v834_v25 }
 0x249 PF: > { %s4540_s0 = sld [smem:[#allocation31_spill]] }
 0x24f   : > { %p2076_p0 = scmp.ne.s32.totalorder %s4540_s0, 0 }
 0x250   : > { %v873_v26 = vld [vmem:[%s3781_s13] sm:$0xff] (!%p2076_p0)  ;;  %v874_v27 = vld [vmem:[%s3781_s13 + $0x8] sm:$0xff] (!%p2076_p0)  ;;  %v875_v28 = vld [vmem:[%s3781_s13 + $0x10] sm:$0xff] (!%p2076_p0)  ;;  %s3860_s10 = scalar_lea.vmem (!%p2076_p0), [#allocation2], %s3793_s7 }
 0x251   : > { %855 = sbr.rel (%p2076_p0) target bundleno = 855 (0x357), region = 100  ;;  %v2461_v29 = vpack.c.bf16 (!%p2076_p0), %v874_v27, %v873_v26  ;;  %v876_v30 = vld [vmem:[%s3781_s13 + $0x18] sm:$0xff] (!%p2076_p0)  ;;  %v877_v32 = vld [vmem:[%s3781_s13 + $0x20] sm:$0xff] (!%p2076_p0)  ;;  %v878_v33 = vld [vmem:[%s3781_s13 + $0x28] sm:$0xff] (!%p2076_p0) }
 0x252   : > { %v2465_v31 = vpack.c.bf16 (!%p2076_p0), %v876_v30, %v875_v28  ;;  %v2469_v34 = vpack.c.bf16 (!%p2076_p0), %v878_v33, %v877_v32  ;;  %v857_v35 = vld [vmem:[%s3860_s10] sm:$0xff] (!%p2076_p0)  ;;  %v879_v37 = vld [vmem:[%s3781_s13 + $0x30] sm:$0xff] (!%p2076_p0)  ;;  %v880_v38 = vld [vmem:[%s3781_s13 + $0x38] sm:$0xff] (!%p2076_p0) }
 0x253   : > { %2462 = vmatprep.subr.bf16.mxu0 (!%p2076_p0), %v2461_v29  ;;  %2557 = vmatprep.subr.bf16.mxu1 (!%p2076_p0), %v2461_v29  ;;  %v865_v36 = vld [vmem:[%s3860_s10 + $0x40] sm:$0xff] (!%p2076_p0)  ;;  %v2473_v39 = vpack.c.bf16 (!%p2076_p0), %v880_v38, %v879_v37  ;;  %v881_v40 = vld [vmem:[%s3781_s13 + $0x40] sm:$0xff] (!%p2076_p0)  ;;  %v883_v43 = vld [vmem:[%s3781_s13 + $0x50] sm:$0xff] (!%p2076_p0) }
 0x254   : > { %2464 = vmatpush3.bf16.msra.mxu0 (!%p2076_p0), %v2461_v29  ;;  %2565 = vmatpush3.bf16.msra.mxu1 (!%p2076_p0), %v2461_v29  ;;  %v882_v41 = vld [vmem:[%s3781_s13 + $0x48] sm:$0xff] (!%p2076_p0)  ;;  %v884_v44 = vld [vmem:[%s3781_s13 + $0x58] sm:$0xff] (!%p2076_p0)  ;;  %v885_v46 = vld [vmem:[%s3781_s13 + $0x60] sm:$0xff] (!%p2076_p0) }
 0x255   : > { %2466 = vmatprep.subr.bf16.mxu0 (!%p2076_p0), %v2465_v31  ;;  %2558 = vmatprep.subr.bf16.mxu1 (!%p2076_p0), %v2465_v31  ;;  %v2477_v42 = vpack.c.bf16 (!%p2076_p0), %v882_v41, %v881_v40  ;;  %v2481_v45 = vpack.c.bf16 (!%p2076_p0), %v884_v44, %v883_v43  ;;  %v886_v47 = vld [vmem:[%s3781_s13 + $0x68] sm:$0xff] (!%p2076_p0)  ;;  %v887_v49 = vld [vmem:[%s3781_s13 + $0x70] sm:$0xff] (!%p2076_p0)  ;;  %v888_v50 = vld [vmem:[%s3781_s13 + $0x78] sm:$0xff] (!%p2076_p0)  ;;  %s1042_s13 = sshra.s32 (!%p2076_p0), %s3793_s7, 4 }
 0x256   : > { %2303 = vmatprep.mubr.f32.mxu0 (!%p2076_p0), %v857_v35  ;;  %2315 = vmatprep.mubr.f32.mxu1 (!%p2076_p0), %v865_v36  ;;  %v2485_v48 = vpack.c.bf16 (!%p2076_p0), %v886_v47, %v885_v46  ;;  %v2489_v51 = vpack.c.bf16 (!%p2076_p0), %v888_v50, %v887_v49  ;;  %v858_v52 = vld [vmem:[%s3860_s10 + $0x8] sm:$0xff] (!%p2076_p0)  ;;  %v859_v54 = vld [vmem:[%s3860_s10 + $0x10] sm:$0xff] (!%p2076_p0)  ;;  %v860_v56 = vld [vmem:[%s3860_s10 + $0x18] sm:$0xff] (!%p2076_p0)  ;;  %s2077_s2 = sshll.u32 (!%p2076_p0), %s1042_s13, 3 }
 0x257   : > { %v866_v53 = vld [vmem:[%s3860_s10 + $0x48] sm:$0xff] (!%p2076_p0)  ;;  %v867_v55 = vld [vmem:[%s3860_s10 + $0x50] sm:$0xff] (!%p2076_p0)  ;;  %v868_v57 = vld [vmem:[%s3860_s10 + $0x58] sm:$0xff] (!%p2076_p0)  ;;  %s1045_s15 = scalar_lea.vmem (!%p2076_p0), [#allocation3], %s2077_s2 }
 0x258   : > { %2468 = vmatpush3.bf16.msra.mxu0 %v2465_v31  ;;  %2566 = vmatpush3.bf16.msra.mxu1 %v2465_v31  ;;  %v861_v58 = vld [vmem:[%s3860_s10 + $0x20] sm:$0xff]  ;;  %v862_v60 = vld [vmem:[%s3860_s10 + $0x28] sm:$0xff]  ;;  %v863_v62 = vld [vmem:[%s3860_s10 + $0x30] sm:$0xff] }
 0x259   : > { %2470 = vmatprep.subr.bf16.mxu0 %v2469_v34  ;;  %2559 = vmatprep.subr.bf16.mxu1 %v2469_v34  ;;  %v869_v59 = vld [vmem:[%s3860_s10 + $0x60] sm:$0xff]  ;;  %v870_v61 = vld [vmem:[%s3860_s10 + $0x68] sm:$0xff]  ;;  %v871_v63 = vld [vmem:[%s3860_s10 + $0x70] sm:$0xff] }
 0x25a   : > { %v864_v0 = vld [vmem:[%s3860_s10 + $0x38] sm:$0xff] }
 0x25b   : > { %v872_v1 = vld [vmem:[%s3860_s10 + $0x78] sm:$0xff] }
 0x25c   : > { %2472 = vmatpush3.bf16.msra.mxu0 %v2469_v34  ;;  %2567 = vmatpush3.bf16.msra.mxu1 %v2469_v34 }
 0x25d   : > { %2474 = vmatprep.subr.bf16.mxu0 %v2473_v39  ;;  %2560 = vmatprep.subr.bf16.mxu1 %v2473_v39 }
 0x260   : > { %2476 = vmatpush3.bf16.msra.mxu0 %v2473_v39  ;;  %2568 = vmatpush3.bf16.msra.mxu1 %v2473_v39 }
 0x261   : > { %2478 = vmatprep.subr.bf16.mxu0 %v2477_v42  ;;  %2561 = vmatprep.subr.bf16.mxu1 %v2477_v42 }
 0x264   : > { %2480 = vmatpush3.bf16.msra.mxu0 %v2477_v42  ;;  %2569 = vmatpush3.bf16.msra.mxu1 %v2477_v42 }
 0x265   : > { %2482 = vmatprep.subr.bf16.mxu0 %v2481_v45  ;;  %2562 = vmatprep.subr.bf16.mxu1 %v2481_v45 }
 0x268   : > { %2484 = vmatpush3.bf16.msra.mxu0 %v2481_v45  ;;  %2570 = vmatpush3.bf16.msra.mxu1 %v2481_v45 }
 0x269   : > { %2486 = vmatprep.subr.bf16.mxu0 %v2485_v48  ;;  %2563 = vmatprep.subr.bf16.mxu1 %v2485_v48 }
 0x26c   : > { %2488 = vmatpush3.bf16.msra.mxu0 %v2485_v48  ;;  %2571 = vmatpush3.bf16.msra.mxu1 %v2485_v48 }
 0x26d   : > { %2490 = vmatprep.subr.bf16.mxu0 %v2489_v51  ;;  %2564 = vmatprep.subr.bf16.mxu1 %v2489_v51 }
 0x270   : > { %2492 = vmatpush3.bf16.msra.mxu0 %v2489_v51  ;;  %2572 = vmatpush3.bf16.msra.mxu1 %v2489_v51 }
 0x273   : > { %2304 = vmatmul.mubr.f32.vlgmr.msra.gmra.mrb[0].mxu0 %v858_v52  ;;  %2316 = vmatmul.mubr.f32.vlgmr.msra.gmra.mrb[0].mxu1 %v866_v53 }
 0x274   : > { %2306 = vmatprep.mubr.f32.mxu0 %v859_v54  ;;  %2318 = vmatprep.mubr.f32.mxu1 %v867_v55 }
 0x277   : > { %2307 = vmatmul.mubr.f32.gmra.mrb[2].mxu0 %v860_v56  ;;  %2319 = vmatmul.mubr.f32.gmra.mrb[2].mxu1 %v868_v57 }
 0x278   : > { %2309 = vmatprep.mubr.f32.mxu0 %v861_v58  ;;  %2321 = vmatprep.mubr.f32.mxu1 %v869_v59 }
 0x27b   : > { %2310 = vmatmul.mubr.f32.gmra.mrb[4].mxu0 %v862_v60  ;;  %2322 = vmatmul.mubr.f32.gmra.mrb[4].mxu1 %v870_v61 }
 0x27c   : > { %2312 = vmatprep.mubr.f32.mxu0 %v863_v62  ;;  %2324 = vmatprep.mubr.f32.mxu1 %v871_v63 }
 0x27f   : > { %2313 = vmatmul.mubr.f32.gmra.mrb[6].mxu0 %v864_v0  ;;  %2325 = vmatmul.mubr.f32.gmra.mrb[6].mxu1 %v872_v1 }
 0x346   : > { %v2305_v2 = vpop.f32.mrb[0].mxu0  ;;  %v2317_v3 = vpop.f32.mrb[0].mxu1 }
 0x347   : > { %v955_v4 = vpop.f32.mrb[1].mxu0  ;;  %v995_v5 = vpop.f32.mrb[1].mxu1 }
 0x348   : > { %v1034_v6 = vpack.c.bf16 %v2305_v2, %v955_v4  ;;  %v1038_v7 = vpack.c.bf16 %v2317_v3, %v995_v5 }
 0x34a   : > { %1046 = vst [vmem:[%s1045_s15] sm:$0xff] %v1034_v6  ;;  %1050 = vst [vmem:[%s1045_s15 + $0x20] sm:$0xff] %v1038_v7  ;;  %v2308_v8 = vpop.f32.mrb[2].mxu0  ;;  %v2320_v9 = vpop.f32.mrb[2].mxu1 }
 0x34b   : > { %v965_v10 = vpop.f32.mrb[3].mxu0  ;;  %v1005_v11 = vpop.f32.mrb[3].mxu1 }
 0x34c   : > { %v1035_v12 = vpack.c.bf16 %v2308_v8, %v965_v10  ;;  %v1039_v13 = vpack.c.bf16 %v2320_v9, %v1005_v11 }
 0x34e   : > { %1047 = vst [vmem:[%s1045_s15 + $0x8] sm:$0xff] %v1035_v12  ;;  %1051 = vst [vmem:[%s1045_s15 + $0x28] sm:$0xff] %v1039_v13  ;;  %v2311_v14 = vpop.f32.mrb[4].mxu0  ;;  %v2323_v15 = vpop.f32.mrb[4].mxu1 }
 0x34f   : > { %v975_v16 = vpop.f32.mrb[5].mxu0  ;;  %v1015_v17 = vpop.f32.mrb[5].mxu1 }
 0x350   : > { %v1036_v18 = vpack.c.bf16 %v2311_v14, %v975_v16  ;;  %v1040_v19 = vpack.c.bf16 %v2323_v15, %v1015_v17 }
 0x352   : > { %1048 = vst [vmem:[%s1045_s15 + $0x10] sm:$0xff] %v1036_v18  ;;  %1052 = vst [vmem:[%s1045_s15 + $0x30] sm:$0xff] %v1040_v19  ;;  %v2314_v20 = vpop.f32.mrb[6].mxu0  ;;  %v2326_v21 = vpop.f32.mrb[6].mxu1 }
 0x353   : > { %v985_v22 = vpop.f32.mrb[7].mxu0  ;;  %v1025_v23 = vpop.f32.mrb[7].mxu1 }
 0x354   : > { %v1037_v24 = vpack.c.bf16 %v2314_v20, %v985_v22  ;;  %v1041_v25 = vpack.c.bf16 %v2326_v21, %v1025_v23 }
 0x356   : > { %1049 = vst [vmem:[%s1045_s15 + $0x18] sm:$0xff] %v1037_v24  ;;  %1053 = vst [vmem:[%s1045_s15 + $0x38] sm:$0xff] %v1041_v25 }
 0x357 PF: > { %s4541_s21 = sld [smem:[#allocation30_spill]] }
 0x35d   : > { %p2078_p4 = scmp.ne.s32.totalorder %s4541_s21, 0 }
 0x35e   : > { %v3236_v26 = vmov (!%p2078_p4), 0.0  }
 0x35f   : > { %1056 = sbr.rel (%p2078_p4) target bundleno = 871 (0x367), region = 104  ;;  %1057 = vst [vmem:[#allocation4] sm:$0xff] (!%p2078_p4), %v3236_v26  ;;  %1058 = vst [vmem:[#allocation4 + $0x8] sm:$0xff] (!%p2078_p4), %v3236_v26 }
 0x360   : > { %1059 = vst [vmem:[#allocation4 + $0x10] sm:$0xff] (!%p2078_p4), %v3236_v26  ;;  %1060 = vst [vmem:[#allocation4 + $0x18] sm:$0xff] (!%p2078_p4), %v3236_v26 }
 0x361   : > { %1061 = vst [vmem:[#allocation4 + $0x20] sm:$0xff] (!%p2078_p4), %v3236_v26  ;;  %1062 = vst [vmem:[#allocation4 + $0x28] sm:$0xff] (!%p2078_p4), %v3236_v26 }
 0x362   : > { %1063 = vst [vmem:[#allocation4 + $0x30] sm:$0xff] (!%p2078_p4), %v3236_v26  ;;  %1064 = vst [vmem:[#allocation4 + $0x38] sm:$0xff] (!%p2078_p4), %v3236_v26 }
 0x363   : > { %1065 = vst [vmem:[#allocation4 + $0x40] sm:$0xff] (!%p2078_p4), %v3236_v26  ;;  %1066 = vst [vmem:[#allocation4 + $0x48] sm:$0xff] (!%p2078_p4), %v3236_v26 }
 0x364   : > { %1067 = vst [vmem:[#allocation4 + $0x50] sm:$0xff] (!%p2078_p4), %v3236_v26  ;;  %1068 = vst [vmem:[#allocation4 + $0x58] sm:$0xff] (!%p2078_p4), %v3236_v26 }
 0x365   : > { %1069 = vst [vmem:[#allocation4 + $0x60] sm:$0xff] (!%p2078_p4), %v3236_v26  ;;  %1070 = vst [vmem:[#allocation4 + $0x68] sm:$0xff] (!%p2078_p4), %v3236_v26 }
 0x366   : > { %1071 = vst [vmem:[#allocation4 + $0x70] sm:$0xff] %v3236_v26  ;;  %1072 = vst [vmem:[#allocation4 + $0x78] sm:$0xff] %v3236_v26 }
 0x367 PF: > { %s1105_s19 = sshra.s32 %s3793_s7, 4  ;;  %v2803_v27 = vld [vmem:[%s3762_s6] sm:$0xff]   ;;  %v2805_v37 = vld [vmem:[%s3762_s6 + $0x8] sm:$0xff]   ;;  %v2807_v39 = vld [vmem:[%s3762_s6 + $0x10] sm:$0xff]  }
 0x368   : > { %s2079_s5 = sshll.u32 %s1105_s19, 3  ;;  %v2804_v28 = vld [vmem:[%s3762_s6 + $0x20] sm:$0xff]   ;;  %2343 = vmatprep.mubr.bf16.mxu0 %v2803_v27  ;;  %v2806_v38 = vld [vmem:[%s3762_s6 + $0x28] sm:$0xff]   ;;  %v2808_v40 = vld [vmem:[%s3762_s6 + $0x30] sm:$0xff]  }
 0x369   : > { %s3893_s9 = scalar_lea.vmem [#allocation3], %s2079_s5  ;;  %2351 = vmatprep.mubr.bf16.mxu1 %v2804_v28  ;;  %v2809_v41 = vld [vmem:[%s3762_s6 + $0x18] sm:$0xff]   ;;  %v1075_v43 = vld [vmem:[#allocation4 + $0x10] sm:$0xff]  ;;  %v1076_v49 = vld [vmem:[#allocation4 + $0x18] sm:$0xff] }
 0x36a   : > { %v1109_v29 = vld [vmem:[%s3893_s9] sm:$0xff]  ;;  %v1110_v30 = vld [vmem:[%s3893_s9 + $0x8] sm:$0xff]  ;;  %v1111_v31 = vld [vmem:[%s3893_s9 + $0x10] sm:$0xff] }
 0x36b   : > { %2327 = vmatprep.subr.bf16.mxu0 %v1109_v29  ;;  %2573 = vmatprep.subr.bf16.mxu1 %v1109_v29  ;;  %v1112_v32 = vld [vmem:[%s3893_s9 + $0x18] sm:$0xff]  ;;  %v1113_v33 = vld [vmem:[%s3893_s9 + $0x20] sm:$0xff]  ;;  %v1114_v34 = vld [vmem:[%s3893_s9 + $0x28] sm:$0xff] }
 0x36c   : > { %2328 = vmatpush3.bf16.msra.mxu0 %v1109_v29  ;;  %2581 = vmatpush3.bf16.msra.mxu1 %v1109_v29  ;;  %v1115_v35 = vld [vmem:[%s3893_s9 + $0x30] sm:$0xff]  ;;  %v1116_v36 = vld [vmem:[%s3893_s9 + $0x38] sm:$0xff]  ;;  %v2810_v42 = vld [vmem:[%s3762_s6 + $0x38] sm:$0xff]   ;;  %s4542_s6 = sld [smem:[#allocation30_spill]] }
 0x36d   : > { %2329 = vmatprep.subr.bf16.mxu0 %v1110_v30  ;;  %2574 = vmatprep.subr.bf16.mxu1 %v1110_v30  ;;  %v1083_v44 = vld [vmem:[#allocation4 + $0x50] sm:$0xff]  ;;  %v1073_v45 = vld [vmem:[#allocation4] sm:$0xff]  ;;  %v1084_v50 = vld [vmem:[#allocation4 + $0x58] sm:$0xff] }
 0x36e   : > { %v1081_v46 = vld [vmem:[#allocation4 + $0x40] sm:$0xff]  ;;  %v1074_v55 = vld [vmem:[#allocation4 + $0x8] sm:$0xff]  ;;  %v1079_v3 = vld [vmem:[#allocation4 + $0x30] sm:$0xff] }
 0x36f   : > { %v1082_v56 = vld [vmem:[#allocation4 + $0x48] sm:$0xff]  ;;  %v1087_v4 = vld [vmem:[#allocation4 + $0x70] sm:$0xff]  ;;  %v1077_v5 = vld [vmem:[#allocation4 + $0x20] sm:$0xff] }
 0x370   : > { %2330 = vmatpush3.bf16.msra.mxu0 %v1110_v30  ;;  %2582 = vmatpush3.bf16.msra.mxu1 %v1110_v30  ;;  %v1085_v6 = vld [vmem:[#allocation4 + $0x60] sm:$0xff]  ;;  %v1080_v9 = vld [vmem:[#allocation4 + $0x38] sm:$0xff]  ;;  %v1078_v15 = vld [vmem:[#allocation4 + $0x28] sm:$0xff] }
 0x371   : > { %2331 = vmatprep.subr.bf16.mxu0 %v1111_v31  ;;  %2575 = vmatprep.subr.bf16.mxu1 %v1111_v31  ;;  %v1088_v10 = vld [vmem:[#allocation4 + $0x78] sm:$0xff]  ;;  %v1086_v16 = vld [vmem:[#allocation4 + $0x68] sm:$0xff] }
 0x372   : > { %p2088_p8 = scmp.ne.s32.totalorder %s4542_s6, 1 }
 0x373   : > { %s4544_s17 = sld [smem:[#allocation31_spill]] (!%p2088_p8)  ;;  %v3915_v28 = vld [vmem:[%s613_s27] ss:$0 sm:$0xff] (!%p2088_p8)  ;;  %s4546_s27 = sld [smem:[#allocation32_spill]] (!%p2088_p8) }
 0x374   : > { %2332 = vmatpush3.bf16.msra.mxu0 %v1111_v31  ;;  %2583 = vmatpush3.bf16.msra.mxu1 %v1111_v31 }
 0x375   : > { %2333 = vmatprep.subr.bf16.mxu0 %v1112_v32  ;;  %2576 = vmatprep.subr.bf16.mxu1 %v1112_v32 }
 0x378   : > { %2334 = vmatpush3.bf16.msra.mxu0 %v1112_v32  ;;  %2584 = vmatpush3.bf16.msra.mxu1 %v1112_v32 }
 0x379   : > { %2335 = vmatprep.subr.bf16.mxu0 %v1113_v33  ;;  %2577 = vmatprep.subr.bf16.mxu1 %v1113_v33  ;;  %s4545_s20 = sshll.u32 (!%p2088_p8), %s4544_s17, 7  ;;  %p1672_p7 = scmp.eq.s32.totalorder (!%p2088_p8), %s4546_s27, 2 }
 0x37a   : > { %s3919_s0 = scalar_lea.vmem (!%p2088_p8), [#allocation2], %s4545_s20  ;;  %p2092_p9 = scmp.ne.s32.totalorder (!%p2088_p8), %s4546_s27, 2 }
 0x37b   : > { %v1301_v30 = vld [vmem:[%s3919_s0 + $0x10] sm:$0xff] (!%p2088_p8)  ;;  %v1299_v32 = vld [vmem:[%s3919_s0] sm:$0xff] (!%p2088_p8) }
 0x37c   : > { %2336 = vmatpush3.bf16.msra.mxu0 %v1113_v33  ;;  %2585 = vmatpush3.bf16.msra.mxu1 %v1113_v33 }
 0x37d   : > { %2337 = vmatprep.subr.bf16.mxu0 %v1114_v34  ;;  %2578 = vmatprep.subr.bf16.mxu1 %v1114_v34 }
 0x380   : > { %2338 = vmatpush3.bf16.msra.mxu0 %v1114_v34  ;;  %2586 = vmatpush3.bf16.msra.mxu1 %v1114_v34  ;;  %v1302_v34 = vld [vmem:[%s3919_s0 + $0x18] sm:$0xff] (!%p2088_p8) }
 0x381   : > { %2339 = vmatprep.subr.bf16.mxu0 %v1115_v35  ;;  %2579 = vmatprep.subr.bf16.mxu1 %v1115_v35 }
 0x384   : > { %2340 = vmatpush3.bf16.msra.mxu0 %v1115_v35  ;;  %2587 = vmatpush3.bf16.msra.mxu1 %v1115_v35 }
 0x385   : > { %2341 = vmatprep.subr.bf16.mxu0 %v1116_v36  ;;  %2580 = vmatprep.subr.bf16.mxu1 %v1116_v36 }
 0x388   : > { %2342 = vmatpush3.bf16.msra.mxu0 %v1116_v36  ;;  %2588 = vmatpush3.bf16.msra.mxu1 %v1116_v36  ;;  %v1300_v36 = vld [vmem:[%s3919_s0 + $0x8] sm:$0xff] (!%p2088_p8) }
 0x38b   : > { %2344 = vmatmul.mubr.bf16.vlgmr.msra.gmra.mrb[0].mxu0 %v2805_v37  ;;  %2352 = vmatmul.mubr.bf16.vlgmr.msra.gmra.mrb[0].mxu1 %v2806_v38 }
 0x38c   : > { %2347 = vmatprep.mubr.bf16.mxu0 %v2807_v39  ;;  %2355 = vmatprep.mubr.bf16.mxu1 %v2808_v40 }
 0x393   : > { %2348 = vmatmul.mubr.bf16.gmra.mrb[4].mxu0 %v2809_v41  ;;  %2356 = vmatmul.mubr.bf16.gmra.mrb[4].mxu1 %v2810_v42 }
 0x45e   : > { %v2345_v47 = vpop.f32.mrb[0].mxu0  ;;  %v2353_v48 = vpop.f32.mrb[0].mxu1 }
 0x45f   : > { %v1264_v51 = vadd.f32 %v2345_v47, %v1075_v43  ;;  %v1272_v52 = vadd.f32 %v2353_v48, %v1083_v44  ;;  %v1199_v53 = vpop.f32.mrb[1].mxu0  ;;  %v1231_v54 = vpop.f32.mrb[1].mxu1  ;;  %v1304_v47 = vld [vmem:[%s3919_s0 + $0x28] sm:$0xff] (!%p2088_p8) }
 0x460   : > { %v1262_v57 = vadd.f32 %v1199_v53, %v1073_v45  ;;  %v1270_v58 = vadd.f32 %v1231_v54, %v1081_v46  ;;  %v2346_v59 = vpop.f32.mrb[2].mxu0  ;;  %v2354_v60 = vpop.f32.mrb[2].mxu1 }
 0x461   : > { %1280 = vst [vmem:[#allocation4 + $0x10] sm:$0xff] %v1264_v51  ;;  %1288 = vst [vmem:[#allocation4 + $0x50] sm:$0xff] %v1272_v52  ;;  %v1265_v61 = vadd.f32 %v2346_v59, %v1076_v49  ;;  %v1273_v62 = vadd.f32 %v2354_v60, %v1084_v50  ;;  %v1202_v63 = vpop.f32.mrb[3].mxu0  ;;  %v1234_v0 = vpop.f32.mrb[3].mxu1  ;;  %v1303_v49 = vld [vmem:[%s3919_s0 + $0x20] sm:$0xff] (!%p2088_p8) }
 0x462   : > { %1278 = vst [vmem:[#allocation4] sm:$0xff] %v1262_v57  ;;  %1286 = vst [vmem:[#allocation4 + $0x40] sm:$0xff] %v1270_v58  ;;  %v1263_v1 = vadd.f32 %v1202_v63, %v1074_v55  ;;  %v1271_v2 = vadd.f32 %v1234_v0, %v1082_v56  ;;  %v1306_v57 = vld [vmem:[%s3919_s0 + $0x38] sm:$0xff] (!%p2088_p8)  ;;  %v1305_v58 = vld [vmem:[%s3919_s0 + $0x30] sm:$0xff] (!%p2088_p8) }
 0x463   : > { %1281 = vst [vmem:[#allocation4 + $0x18] sm:$0xff] %v1265_v61  ;;  %1289 = vst [vmem:[#allocation4 + $0x58] sm:$0xff] %v1273_v62 }
 0x464   : > { %1279 = vst [vmem:[#allocation4 + $0x8] sm:$0xff] %v1263_v1  ;;  %1287 = vst [vmem:[#allocation4 + $0x48] sm:$0xff] %v1271_v2  ;;  %v1308_v1 = vld [vmem:[%s3919_s0 + $0x48] sm:$0xff] (!%p2088_p8)  ;;  %v1307_v2 = vld [vmem:[%s3919_s0 + $0x40] sm:$0xff] (!%p2088_p8) }
 0x466   : > { %v2349_v7 = vpop.f32.mrb[4].mxu0  ;;  %v2357_v8 = vpop.f32.mrb[4].mxu1  ;;  %1297 = sbr.rel (%p2088_p8) target bundleno = 1864 (0x748), region = 108 }
 0x467   : > { %v1268_v11 = vadd.f32 %v2349_v7, %v1079_v3  ;;  %v1276_v12 = vadd.f32 %v2357_v8, %v1087_v4  ;;  %v1215_v13 = vpop.f32.mrb[5].mxu0  ;;  %v1247_v14 = vpop.f32.mrb[5].mxu1  ;;  %v1310_v7 = vld [vmem:[%s3919_s0 + $0x58] sm:$0xff] (!%p2088_p8) }
 0x468   : > { %v1266_v17 = vadd.f32 %v1215_v13, %v1077_v5  ;;  %v1274_v18 = vadd.f32 %v1247_v14, %v1085_v6  ;;  %v2350_v19 = vpop.f32.mrb[6].mxu0  ;;  %v2358_v20 = vpop.f32.mrb[6].mxu1  ;;  %v1317_v27 = vld [vmem:[#allocation4 + $0x10] sm:$0xff] (!%p2088_p8) }
 0x469   : > { %1284 = vst [vmem:[#allocation4 + $0x30] sm:$0xff] %v1268_v11  ;;  %1292 = vst [vmem:[#allocation4 + $0x70] sm:$0xff] %v1276_v12  ;;  %v1269_v21 = vadd.f32 %v2350_v19, %v1080_v9  ;;  %v1277_v22 = vadd.f32 %v2358_v20, %v1088_v10  ;;  %v1218_v23 = vpop.f32.mrb[7].mxu0  ;;  %v1250_v24 = vpop.f32.mrb[7].mxu1  ;;  %v1315_v29 = vld [vmem:[#allocation4] sm:$0xff] (!%p2088_p8)  ;;  %v1340_v31 = vadd.f32 (!%p2088_p8), %v3915_v28, %v1317_v27  ;;  %v1325_v3 = vld [vmem:[#allocation4 + $0x50] sm:$0xff] (!%p2088_p8) }
 0x46a   : > { %1282 = vst [vmem:[#allocation4 + $0x20] sm:$0xff] %v1266_v17  ;;  %1290 = vst [vmem:[#allocation4 + $0x60] sm:$0xff] %v1274_v18  ;;  %v1267_v25 = vadd.f32 %v1218_v23, %v1078_v15  ;;  %v1275_v26 = vadd.f32 %v1250_v24, %v1086_v16  ;;  %v1338_v33 = vadd.f32 (!%p2088_p8), %v3915_v28, %v1315_v29  ;;  %v1318_v35 = vld [vmem:[#allocation4 + $0x18] sm:$0xff] (!%p2088_p8)  ;;  %v1323_v59 = vld [vmem:[#allocation4 + $0x40] sm:$0xff] (!%p2088_p8) }
 0x46b   : > { %1285 = vst [vmem:[#allocation4 + $0x38] sm:$0xff] %v1269_v21  ;;  %1293 = vst [vmem:[#allocation4 + $0x78] sm:$0xff] %v1277_v22  ;;  %v1316_v37 = vld [vmem:[#allocation4 + $0x8] sm:$0xff] (!%p2088_p8)  ;;  %v3927_v38 = vadd.f32 (!%p2088_p8), %v1340_v31, %v1301_v30  ;;  %v1341_v40 = vadd.f32 (!%p2088_p8), %v3915_v28, %v1318_v35  ;;  %v1346_v63 = vadd.f32 (!%p2088_p8), %v3915_v28, %v1323_v59  ;;  %v1326_v0 = vld [vmem:[#allocation4 + $0x58] sm:$0xff] (!%p2088_p8) }
 0x46c   : > { %1283 = vst [vmem:[#allocation4 + $0x28] sm:$0xff] %v1267_v25  ;;  %1291 = vst [vmem:[#allocation4 + $0x68] sm:$0xff] %v1275_v26  ;;  %v3929_v39 = vadd.f32 (!%p2088_p8), %v1338_v33, %v1299_v32  ;;  %v1339_v41 = vadd.f32 (!%p2088_p8), %v3915_v28, %v1316_v37  ;;  %v1324_v56 = vld [vmem:[#allocation4 + $0x48] sm:$0xff] (!%p2088_p8)  ;;  %v1349_v4 = vadd.f32 (!%p2088_p8), %v3915_v28, %v1326_v0  ;;  %v1309_v9 = vld [vmem:[%s3919_s0 + $0x50] sm:$0xff] (!%p2088_p8) }
 0x46d   : > { %1374 = vadd.xlane.f32.xlu1 %v3927_v38  ;;  %v3936_v45 = vadd.f32 %v1341_v40, %v1302_v34  ;;  %v1347_v60 = vadd.f32 %v3915_v28, %v1324_v56  ;;  %v3968_v6 = vadd.f32 %v1346_v63, %v1307_v2  ;;  %v1348_v8 = vadd.f32 %v3915_v28, %v1325_v3  ;;  %v1312_v17 = vld [vmem:[%s3919_s0 + $0x68] sm:$0xff]  ;;  %v1311_v18 = vld [vmem:[%s3919_s0 + $0x60] sm:$0xff]  ;;  %v1314_v24 = vld [vmem:[%s3919_s0 + $0x78] sm:$0xff]  ;;  %s4551_s26 = scalar_lea.vmem (!%p2092_p9), [#allocation11], %s3769_s12 }
 0x46e   : > { %1370 = vadd.xlane.f32.xlu0 %v3929_v39  ;;  %v3938_v46 = vadd.f32 %v1339_v41, %v1300_v36  ;;  %v3973_v12 = vadd.f32 %v1349_v4, %v1310_v7  ;;  %v1313_v25 = vld [vmem:[%s3919_s0 + $0x70] sm:$0xff]  ;;  %v1420_v31 = vmul.f32 %v3927_v38, %v3927_v38  ;;  %vm3238_vm0 = vmmov (!%p2092_p9), 0  }
 0x46f   : > { %v3966_v5 = vadd.f32 %v1347_v60, %v1308_v1  ;;  %v3977_v13 = vadd.f32 %v1348_v8, %v1309_v9  ;;  %v1421_v30 = vmul.f32 %v3936_v45, %v3936_v45  ;;  %v1426_v37 = vmul.f32 %v3968_v6, %v3968_v6 }
 0x470   : > { %v1321_v51 = vld [vmem:[#allocation4 + $0x30] sm:$0xff]  ;;  %v1419_v29 = vmul.f32 %v3938_v46, %v3938_v46  ;;  %v1429_v40 = vmul.f32 %v3973_v12, %v3973_v12 }
 0x471   : > { %v1319_v44 = vld [vmem:[#allocation4 + $0x20] sm:$0xff]  ;;  %1376 = vadd.xlane.f32.xlu1 %v3936_v45  ;;  %v1344_v55 = vadd.f32 %v3915_v28, %v1321_v51  ;;  %v1329_v19 = vld [vmem:[#allocation4 + $0x70] sm:$0xff]  ;;  %v1427_v36 = vmul.f32 %v3966_v5, %v3966_v5  ;;  %v1428_v41 = vmul.f32 %v3977_v13, %v3977_v13 }
 0x472   : > { %v1342_v48 = vadd.f32 %v3915_v28, %v1319_v44  ;;  %v1322_v50 = vld [vmem:[#allocation4 + $0x38] sm:$0xff]  ;;  %1372 = vadd.xlane.f32.xlu0 %v3938_v46  ;;  %v1327_v11 = vld [vmem:[#allocation4 + $0x60] sm:$0xff]  ;;  %v1352_v23 = vadd.f32 %v3915_v28, %v1329_v19 }
 0x473   : > { %v1320_v42 = vld [vmem:[#allocation4 + $0x28] sm:$0xff]  ;;  %v1345_v54 = vadd.f32 %v3915_v28, %v1322_v50  ;;  %v3958_v62 = vadd.f32 %v1344_v55, %v1305_v58  ;;  %v1350_v15 = vadd.f32 %v3915_v28, %v1327_v11  ;;  %v1330_v16 = vld [vmem:[#allocation4 + $0x78] sm:$0xff] }
 0x474   : > { %v1343_v43 = vadd.f32 %v3915_v28, %v1320_v42  ;;  %v3947_v53 = vadd.f32 %v1342_v48, %v1303_v49  ;;  %v1328_v10 = vld [vmem:[#allocation4 + $0x68] sm:$0xff]  ;;  %v1353_v20 = vadd.f32 %v3915_v28, %v1330_v16  ;;  %v3997_v27 = vadd.f32 %v1352_v23, %v1313_v25 }
 0x475   : > { %v3956_v61 = vadd.f32 %v1345_v54, %v1306_v57  ;;  %v1351_v14 = vadd.f32 %v3915_v28, %v1328_v10  ;;  %v3988_v22 = vadd.f32 %v1350_v15, %v1311_v18  ;;  %v1418_v28 = vmul.f32 %v3929_v39, %v3929_v39 }
 0x476   : > { %v3943_v52 = vadd.f32 %v1343_v43, %v1304_v47  ;;  %1378 = vadd.xlane.f32.xlu0 %v3947_v53  ;;  %v3995_v26 = vadd.f32 %v1353_v20, %v1314_v24  ;;  %v1422_v33 = vmul.f32 %v3947_v53, %v3947_v53  ;;  %v1424_v35 = vmul.f32 %v3958_v62, %v3958_v62 }
 0x477   : > { %v3986_v21 = vadd.f32 %v1351_v14, %v1312_v17  ;;  %v1425_v34 = vmul.f32 %v3956_v61, %v3956_v61  ;;  %v1430_v43 = vmul.f32 %v3988_v22, %v3988_v22  ;;  %v1432_v47 = vmul.f32 %v3997_v27, %v3997_v27 }
 0x478   : > { %1380 = vadd.xlane.f32.xlu1 %v3943_v52  ;;  %v1423_v32 = vmul.f32 %v3943_v52, %v3943_v52  ;;  %v1433_v44 = vmul.f32 %v3995_v26, %v3995_v26 }
 0x479   : > { %v1431_v42 = vmul.f32 %v3986_v21, %v3986_v21 }
 0x47a   : > { %1382 = vadd.xlane.f32.xlu0 %v3958_v62 }
 0x47c   : > { %1384 = vadd.xlane.f32.xlu1 %v3956_v61 }
 0x47e   : > { %1386 = vadd.xlane.f32.xlu0 %v3968_v6 }
 0x480   : > { %1388 = vadd.xlane.f32.xlu1 %v3966_v5 }
 0x482   : > { %1390 = vadd.xlane.f32.xlu0 %v3977_v13 }
 0x484   : > { %1392 = vadd.xlane.f32.xlu1 %v3973_v12 }
 0x486   : > { %1394 = vadd.xlane.f32.xlu0 %v3988_v22 }
 0x488   : > { %1396 = vadd.xlane.f32.xlu1 %v3986_v21 }
 0x48a   : > { %1398 = vadd.xlane.f32.xlu0 %v3997_v27 }
 0x48c   : > { %1400 = vadd.xlane.f32.xlu1 %v3995_v26 }
 0x48e   : > { %1434 = vadd.xlane.f32.xlu0 %v1418_v28 }
 0x490   : > { %1436 = vadd.xlane.f32.xlu1 %v1419_v29 }
 0x492   : > { %1438 = vadd.xlane.f32.xlu0 %v1420_v31 }
 0x494   : > { %1440 = vadd.xlane.f32.xlu1 %v1421_v30 }
 0x496   : > { %1442 = vadd.xlane.f32.xlu0 %v1422_v33 }
 0x498   : > { %1444 = vadd.xlane.f32.xlu1 %v1423_v32 }
 0x49a   : > { %1446 = vadd.xlane.f32.xlu0 %v1424_v35 }
 0x49c   : > { %1448 = vadd.xlane.f32.xlu1 %v1425_v34 }
 0x49e   : > { %1450 = vadd.xlane.f32.xlu0 %v1426_v37 }
 0x4a0   : > { %1452 = vadd.xlane.f32.xlu1 %v1427_v36 }
 0x4a2   : > { %1454 = vadd.xlane.f32.xlu0 %v1428_v41 }
 0x4a4   : > { %1456 = vadd.xlane.f32.xlu1 %v1429_v40 }
 0x4a6   : > { %1458 = vadd.xlane.f32.xlu0 %v1430_v43 }
 0x4a8   : > { %1460 = vadd.xlane.f32.xlu1 %v1431_v42 }
 0x4aa   : > { %1462 = vadd.xlane.f32.xlu0 %v1432_v47 }
 0x4ac   : > { %1464 = vadd.xlane.f32.xlu1 %v1433_v44 }
 0x4fa   : > { %v1375_v48 = vpop.xlane.xlu1 %1374 }
 0x4fb   : > { %v1371_v49 = vpop.xlane.xlu0 %1370  ;;  %v4048_v8 = vmul.f32 0.015625, %v1375_v48 }
 0x4fc   : > { %v4044_v4 = vmul.f32 0.015625, %v1371_v49 }
 0x4fd   : > { %v1484_v19 = vmul.f32 %v4048_v8, %v4048_v8  ;;  %v1532_v20 = vsub.f32 %v3927_v38, %v4048_v8 }
 0x4fe   : > { %v1377_v50 = vpop.xlane.xlu1 %1376  ;;  %v1482_v15 = vmul.f32 %v4044_v4, %v4044_v4  ;;  %v1530_v24 = vsub.f32 %v3929_v39, %v4044_v4 }
 0x4ff   : > { %v1373_v51 = vpop.xlane.xlu0 %1372  ;;  %v4050_v9 = vmul.f32 0.015625, %v1377_v50 }
 0x500   : > { %v4046_v7 = vmul.f32 0.015625, %v1373_v51 }
 0x501   : > { %v1485_v25 = vmul.f32 %v4050_v9, %v4050_v9  ;;  %v1533_v30 = vsub.f32 %v3936_v45, %v4050_v9 }
 0x502   : > { %v1483_v16 = vmul.f32 %v4046_v7, %v4046_v7  ;;  %v1531_v31 = vsub.f32 %v3938_v46, %v4046_v7 }
 0x503   : > { %v1379_v55 = vpop.xlane.xlu0 %1378 }
 0x504   : > { %v4062_v23 = vmul.f32 0.015625, %v1379_v55 }
 0x505   : > { %v1381_v54 = vpop.xlane.xlu1 %1380 }
 0x506   : > { %v4052_v10 = vmul.f32 0.015625, %v1381_v54  ;;  %v1486_v43 = vmul.f32 %v4062_v23, %v4062_v23  ;;  %v1534_v54 = vsub.f32 %v3947_v53, %v4062_v23 }
 0x507   : > { %v1383_v57 = vpop.xlane.xlu0 %1382 }
 0x508   : > { %v1487_v32 = vmul.f32 %v4052_v10, %v4052_v10  ;;  %v1535_v42 = vsub.f32 %v3943_v52, %v4052_v10  ;;  %v4080_v44 = vmul.f32 0.015625, %v1383_v57 }
 0x509   : > { %v1385_v56 = vpop.xlane.xlu1 %1384 }
 0x50a   : > { %v4074_v33 = vmul.f32 0.015625, %v1385_v56 }
 0x50b   : > { %v1387_v59 = vpop.xlane.xlu0 %1386 }
 0x50c   : > { %v1489_v55 = vmul.f32 %v4074_v33, %v4074_v33  ;;  %v1537_v56 = vsub.f32 %v3956_v61, %v4074_v33 }
 0x50d   : > { %v1389_v58 = vpop.xlane.xlu1 %1388 }
 0x50e   : > { %v4082_v47 = vmul.f32 0.015625, %v1389_v58 }
 0x50f   : > { %v4034_v63 = vpop.xlane.xlu0 %1390 }
 0x511   : > { %v1393_v60 = vpop.xlane.xlu1 %1392 }
 0x513   : > { %v4038_v1 = vpop.xlane.xlu0 %1394 }
 0x515   : > { %v4036_v0 = vpop.xlane.xlu1 %1396 }
 0x517   : > { %v4042_v3 = vpop.xlane.xlu0 %1398 }
 0x519   : > { %v4040_v2 = vpop.xlane.xlu1 %1400 }
 0x51b   : > { %v1435_v14 = vpop.xlane.xlu0 %1434 }
 0x51c   : > { %v1466_v18 = vmul.f32 0.015625, %v1435_v14 }
 0x51d   : > { %v1437_v11 = vpop.xlane.xlu1 %1436 }
 0x51e   : > { %v1467_v17 = vmul.f32 0.015625, %v1437_v11  ;;  %v1498_v28 = vsub.f32 %v1466_v18, %v1482_v15  ;;  %v4090_v11 = vmul.f32 0.015625, %v1387_v59  ;;  %v1536_v18 = vsub.f32 %v3958_v62, %v4080_v44 }
 0x51f   : > { %v1439_v35 = vpop.xlane.xlu0 %1438 }
 0x520   : > { %v1499_v29 = vsub.f32 %v1467_v17, %v1483_v16  ;;  %v1514_v37 = vmax.f32 %v1498_v28, 0.0  ;;  %v1468_v41 = vmul.f32 0.015625, %v1439_v35  ;;  %v1488_v17 = vmul.f32 %v4080_v44, %v4080_v44 }
 0x521   : > { %v1441_v34 = vpop.xlane.xlu1 %1440  ;;  %v1490_v35 = vmul.f32 %v4090_v11, %v4090_v11 }
 0x522   : > { %v1515_v36 = vmax.f32 %v1499_v29, 0.0  ;;  %v1469_v40 = vmul.f32 0.015625, %v1441_v34  ;;  %v1546_v49 = vadd.f32 1e-05, %v1514_v37  ;;  %v1500_v51 = vsub.f32 %v1468_v41, %v1484_v19 }
 0x523   : > { %v1443_v57 = vpop.xlane.xlu0 %1442 }
 0x524   : > { %v1547_v48 = vadd.f32 1e-05, %v1515_v36  ;;  %v1501_v50 = vsub.f32 %v1469_v40, %v1485_v25  ;;  %v1516_v15 = vmax.f32 %v1500_v51, 0.0  ;;  %v1470_v19 = vmul.f32 0.015625, %v1443_v57 }
 0x525   : > { %v1445_v14 = vpop.xlane.xlu1 %1444  ;;  %v1491_v25 = vmul.f32 %v4082_v47, %v4082_v47  ;;  %v4102_v36 = vmul.f32 0.015625, %v1393_v60  ;;  %v4105_v51 = vmul.f32 0.015625, %v4034_v63  ;;  %v4118_v63 = vmul.f32 0.015625, %v4040_v2 }
 0x526   : > { %2811 = vrsqrt.f32 %v1547_v48  ;;  %v1517_v58 = vmax.f32 %v1501_v50, 0.0  ;;  %v1471_v16 = vmul.f32 0.015625, %v1445_v14  ;;  %v1548_v59 = vadd.f32 1e-05, %v1516_v15 }
 0x527   : > { %2813 = vrsqrt.f32 %v1546_v49  ;;  %v1502_v37 = vsub.f32 %v1470_v19, %v1486_v43  ;;  %v1447_v41 = vpop.xlane.xlu0 %1446  ;;  %v1493_v15 = vmul.f32 %v4102_v36, %v4102_v36 }
 0x528   : > { %v1549_v29 = vadd.f32 1e-05, %v1517_v58  ;;  %v1503_v28 = vsub.f32 %v1471_v16, %v1487_v32  ;;  %v1472_v50 = vmul.f32 0.015625, %v1447_v41  ;;  %v4108_v32 = vmul.f32 0.015625, %v4036_v0 }
 0x529   : > { %v1449_v40 = vpop.xlane.xlu1 %1448  ;;  %v1518_v14 = vmax.f32 %v1502_v37, 0.0  ;;  %v4115_v16 = vmul.f32 0.015625, %v4038_v1  ;;  %v4131_v1 = vld [vmem:[%s616_s29] ss:$0 sm:$0xff]  ;;  %v4134_v41 = vmul.f32 0.015625, %v4042_v3 }
 0x52a   : > { %2815 = vrsqrt.f32 %v1549_v29  ;;  %v1519_v48 = vmax.f32 %v1503_v28, 0.0  ;;  %v1473_v49 = vmul.f32 0.015625, %v1449_v40  ;;  %v1504_v58 = vsub.f32 %v1472_v50, %v1488_v17 }
 0x52b   : > { %2817 = vrsqrt.f32 %v1548_v59  ;;  %v1550_v0 = vadd.f32 1e-05, %v1518_v14  ;;  %v1451_v29 = vpop.xlane.xlu0 %1450  ;;  %v4124_v17 = vmul.f32 %v4108_v32, %v4108_v32 }
 0x52c   : > { %v1551_v60 = vadd.f32 1e-05, %v1519_v48  ;;  %v1505_v43 = vsub.f32 %v1473_v49, %v1489_v55  ;;  %v1520_v28 = vmax.f32 %v1504_v58, 0.0  ;;  %v1492_v55 = vmul.f32 %v4105_v51, %v4105_v51 }
 0x52d   : > { %v1453_v19 = vpop.xlane.xlu1 %1452  ;;  %v1474_v2 = vmul.f32 0.015625, %v1451_v29 }
 0x52e   : > { %2819 = vrsqrt.f32 %v1551_v60  ;;  %v1521_v59 = vmax.f32 %v1505_v43, 0.0  ;;  %v1475_v37 = vmul.f32 0.015625, %v1453_v19  ;;  %v1552_v49 = vadd.f32 1e-05, %v1520_v28 }
 0x52f   : > { %2821 = vrsqrt.f32 %v1550_v0  ;;  %v4138_v60 = vmul.f32 %v4115_v16, %v4115_v16  ;;  %v4142_v43 = vmul.f32 %v4118_v63, %v4118_v63  ;;  %v1506_v0 = vsub.f32 %v1474_v2, %v1490_v35  ;;  %v1455_v3 = vpop.xlane.xlu0 %1454 }
 0x530   : > { %v2812_v40 = vpop.eup %2811  ;;  %v1553_v48 = vadd.f32 1e-05, %v1521_v59  ;;  %v1507_v50 = vsub.f32 %v1475_v37, %v1491_v25  ;;  %v4152_v25 = vld [vmem:[%s619_s8] ss:$0 sm:$0xff]  ;;  %v1476_v7 = vmul.f32 0.015625, %v1455_v3  ;;  %v4160_v35 = vmul.f32 %v4134_v41, %v4134_v41 }
 0x531   : > { %v2814_v14 = vpop.eup %2813  ;;  %v1579_v58 = vmul.f32 %v2812_v40, %v1531_v31  ;;  %v1457_v19 = vpop.xlane.xlu1 %1456  ;;  %v1522_v46 = vmax.f32 %v1506_v0, 0.0 }
 0x532   : > { %v1578_v29 = vmul.f32 %v2814_v14, %v1530_v24  ;;  %2823 = vrsqrt.f32 %v1553_v48  ;;  %v1523_v59 = vmax.f32 %v1507_v50, 0.0  ;;  %v1477_v28 = vmul.f32 0.015625, %v1457_v19 }
 0x533   : > { %v1602_v37 = vmul.f32 %v4131_v1, %v1579_v58  ;;  %2825 = vrsqrt.f32 %v1552_v49  ;;  %v1554_v24 = vadd.f32 1e-05, %v1522_v46  ;;  %v1508_v48 = vsub.f32 %v1476_v7, %v1492_v55  ;;  %v1459_v50 = vpop.xlane.xlu0 %1458 }
 0x534   : > { %v2816_v31 = vpop.eup %2815  ;;  %v1601_v2 = vmul.f32 %v4131_v1, %v1578_v29  ;;  %v1555_v40 = vadd.f32 1e-05, %v1523_v59  ;;  %v1509_v57 = vsub.f32 %v1477_v28, %v1493_v15 }
 0x535   : > { %v2818_v34 = vpop.eup %2817  ;;  %v4164_v39 = vadd.f32 %v4152_v25, %v1602_v37  ;;  %v1581_v4 = vmul.f32 %v2816_v31, %v1533_v30  ;;  %v1461_v49 = vpop.xlane.xlu1 %1460  ;;  %v1524_v9 = vmax.f32 %v1508_v48, 0.0 }
 0x536   : > { %v4170_v14 = vadd.f32 %v4152_v25, %v1601_v2  ;;  %v1580_v15 = vmul.f32 %v2818_v34, %v1532_v20  ;;  %2827 = vrsqrt.f32 %v1555_v40  ;;  %v1525_v58 = vmax.f32 %v1509_v57, 0.0 }
 0x537   : > { %v1641_v0 = vmax.f32 %v4164_v39, 0.0  ;;  %v1604_v45 = vmul.f32 %v4131_v1, %v1581_v4  ;;  %2829 = vrsqrt.f32 %v1554_v24  ;;  %v1479_v29 = vmul.f32 0.015625, %v1461_v49  ;;  %v1463_v7 = vpop.xlane.xlu0 %1462 }
 0x538   : > { %v2820_v30 = vpop.eup %2819  ;;  %v1640_v55 = vmax.f32 %v4170_v14, 0.0  ;;  %v1603_v19 = vmul.f32 %v4131_v1, %v1580_v15  ;;  %v1557_v3 = vadd.f32 1e-05, %v1525_v58  ;;  %v1556_v20 = vadd.f32 1e-05, %v1524_v9 }
 0x539   : > { %v2822_v59 = vpop.eup %2821  ;;  %1657 = vst [vmem:[%s3919_s0 + $0x8] sm:$0xff] %v1641_v0  ;;  %v4183_v38 = vadd.f32 %v4152_v25, %v1604_v45  ;;  %v1583_v8 = vmul.f32 %v2820_v30, %v1535_v42  ;;  %v1478_v34 = vmul.f32 0.015625, %v1459_v50  ;;  %v1465_v57 = vpop.xlane.xlu1 %1464  ;;  %v1511_v46 = vsub.f32 %v1479_v29, %v4124_v17 }
 0x53a   : > { %1656 = vst [vmem:[%s3919_s0] sm:$0xff] %v1640_v55  ;;  %v4192_v28 = vadd.f32 %v4152_v25, %v1603_v19  ;;  %v1582_v37 = vmul.f32 %v2822_v59, %v1534_v54  ;;  %2831 = vrsqrt.f32 %v1557_v3  ;;  %v1481_v53 = vmul.f32 0.015625, %v1465_v57 }
 0x53b   : > { %v1643_v52 = vmax.f32 %v4183_v38, 0.0  ;;  %v1606_v10 = vmul.f32 %v4131_v1, %v1583_v8  ;;  %2833 = vrsqrt.f32 %v1556_v20  ;;  %v1510_v42 = vsub.f32 %v1478_v34, %v4138_v60 }
 0x53c   : > { %v2824_v31 = vpop.eup %2823  ;;  %v1642_v2 = vmax.f32 %v4192_v28, 0.0  ;;  %v1605_v40 = vmul.f32 %v4131_v1, %v1582_v37  ;;  %v1527_v4 = vmax.f32 %v1511_v46, 0.0  ;;  %v1480_v60 = vmul.f32 0.015625, %v1463_v7 }
 0x53d   : > { %v2826_v23 = vpop.eup %2825  ;;  %1659 = vst [vmem:[%s3919_s0 + $0x18] sm:$0xff] %v1643_v52  ;;  %v4207_v54 = vadd.f32 %v4152_v25, %v1606_v10  ;;  %v1585_v17 = vmul.f32 %v2824_v31, %v1537_v56  ;;  %v1526_v24 = vmax.f32 %v1510_v42, 0.0  ;;  %v1513_v15 = vsub.f32 %v1481_v53, %v4142_v43 }
 0x53e   : > { %1658 = vst [vmem:[%s3919_s0 + $0x10] sm:$0xff] %v1642_v2  ;;  %v4216_v48 = vadd.f32 %v4152_v25, %v1605_v40  ;;  %v1584_v49 = vmul.f32 %v2826_v23, %v1536_v18  ;;  %v1559_v50 = vadd.f32 1e-05, %v1527_v4  ;;  %v1512_v58 = vsub.f32 %v1480_v60, %v4160_v35 }
 0x53f   : > { %v1645_v61 = vmax.f32 %v4207_v54, 0.0  ;;  %v1608_v33 = vmul.f32 %v4131_v1, %v1585_v17  ;;  %v1558_v56 = vadd.f32 1e-05, %v1526_v24  ;;  %v1529_v19 = vmax.f32 %v1513_v15, 0.0 }
 0x540   : > { %v2828_v45 = vpop.eup %2827  ;;  %v1644_v9 = vmax.f32 %v4216_v48, 0.0  ;;  %v1607_v30 = vmul.f32 %v4131_v1, %v1584_v49  ;;  %2835 = vrsqrt.f32 %v1559_v50  ;;  %v4549_v18 = vsub.f32 %v3966_v5, %v4082_v47 }
 0x541   : > { %v2830_v62 = vpop.eup %2829  ;;  %1661 = vst [vmem:[%s3919_s0 + $0x28] sm:$0xff] %v1645_v61  ;;  %v4231_v44 = vadd.f32 %v4152_v25, %v1608_v33  ;;  %2837 = vrsqrt.f32 %v1558_v56  ;;  %v1528_v35 = vmax.f32 %v1512_v58, 0.0  ;;  %v4550_v29 = vsub.f32 %v3968_v6, %v4090_v11 }
 0x542   : > { %v1587_v43 = vmul.f32 %v2828_v45, %v4549_v18  ;;  %1660 = vst [vmem:[%s3919_s0 + $0x20] sm:$0xff] %v1644_v9  ;;  %v4240_v3 = vadd.f32 %v4152_v25, %v1607_v30  ;;  %v1561_v8 = vadd.f32 1e-05, %v1529_v19  ;;  %v1541_v20 = vsub.f32 %v3973_v12, %v4102_v36 }
 0x543   : > { %v1586_v59 = vmul.f32 %v2830_v62, %v4550_v29  ;;  %v1647_v5 = vmax.f32 %v4231_v44, 0.0  ;;  %v1560_v34 = vadd.f32 1e-05, %v1528_v35  ;;  %v1540_v37 = vsub.f32 %v3977_v13, %v4105_v51 }
 0x544   : > { %v1610_v47 = vmul.f32 %v4131_v1, %v1587_v43  ;;  %v2832_v57 = vpop.eup %2831  ;;  %v1646_v46 = vmax.f32 %v4240_v3, 0.0  ;;  %2839 = vrsqrt.f32 %v1561_v8  ;;  %v1543_v40 = vsub.f32 %v3986_v21, %v4108_v32 }
 0x545   : > { %v1609_v6 = vmul.f32 %v4131_v1, %v1586_v59  ;;  %v2834_v11 = vpop.eup %2833  ;;  %1663 = vst [vmem:[%s3919_s0 + $0x38] sm:$0xff] %v1647_v5  ;;  %v1589_v36 = vmul.f32 %v2832_v57, %v1541_v20  ;;  %2841 = vrsqrt.f32 %v1560_v34  ;;  %v1542_v23 = vsub.f32 %v3988_v22, %v4115_v16 }
 0x546   : > { %v4257_v12 = vadd.f32 %v4152_v25, %v1610_v47  ;;  %1662 = vst [vmem:[%s3919_s0 + $0x30] sm:$0xff] %v1646_v46  ;;  %v1588_v51 = vmul.f32 %v2834_v11, %v1540_v37  ;;  %v1545_v33 = vsub.f32 %v3995_v26, %v4118_v63  ;;  %v1544_v22 = vsub.f32 %v3997_v27, %v4134_v41 }
 0x547   : > { %v1632_v13 = vadd.f32 %v4152_v25, %v1609_v6  ;;  %v1612_v10 = vmul.f32 %v4131_v1, %v1589_v36  ;;  %v2494_v29 = vpack.c.bf16 (!%p2092_p9), %v1641_v0, %v1640_v55  ;;  %v3237_v59 = vmov (!%p2092_p9), 0.0|0.0  }
 0x548   : > { %v1649_v7 = vmax.f32 %v4257_v12, 0.0  ;;  %v1611_v31 = vmul.f32 %v4131_v1, %v1588_v51  ;;  %2493 = vmatprep.subr.bf16.mxu0 (!%p2092_p9), %v3237_v59  ;;  %v2500_v14 = vpack.c.bf16 (!%p2092_p9), %v1645_v61, %v1644_v9  ;;  %v2503_v39 = vpack.c.bf16 (!%p2092_p9), %v1647_v5, %v1646_v46 }
 0x549   : > { %v1648_v42 = vmax.f32 %v1632_v13, 0.0  ;;  %v1635_v4 = vadd.f32 %v4152_v25, %v1612_v10  ;;  %2495 = vmatpush3.bf16.msra.mxu0 (!%p2092_p9), %v2494_v29 }
 0x54a   : > { %1665 = vst [vmem:[%s3919_s0 + $0x48] sm:$0xff] %v1649_v7  ;;  %v2836_v53 = vpop.eup %2835  ;;  %v1634_v17 = vadd.f32 %v4152_v25, %v1611_v31  ;;  %2496 = vmatprep.subr.bf16.mxu0 (!%p2092_p9), %v3237_v59 }
 0x54b   : > { %1664 = vst [vmem:[%s3919_s0 + $0x40] sm:$0xff] %v1648_v42  ;;  %v2838_v24 = vpop.eup %2837  ;;  %v1651_v60 = vmax.f32 %v1635_v4, 0.0  ;;  %v1591_v49 = vmul.f32 %v2836_v53, %v1543_v40  ;;  %v2506_v0 = vpack.c.bf16 (!%p2092_p9), %v1649_v7, %v1648_v42 }
 0x54c   : > { %v1650_v50 = vmax.f32 %v1634_v17, 0.0  ;;  %v1590_v15 = vmul.f32 %v2838_v24, %v1542_v23 }
 0x54d   : > { %1667 = vst [vmem:[%s3919_s0 + $0x58] sm:$0xff] %v1651_v60  ;;  %v1614_v21 = vmul.f32 %v4131_v1, %v1591_v49 }
 0x54e   : > { %v2840_v32 = vpop.eup %2839  ;;  %1666 = vst [vmem:[%s3919_s0 + $0x50] sm:$0xff] %v1650_v50  ;;  %v1613_v16 = vmul.f32 %v4131_v1, %v1590_v15  ;;  %v2509_v55 = vpack.c.bf16 (!%p2092_p9), %v1651_v60, %v1650_v50 }
 0x54f   : > { %v2842_v56 = vpop.eup %2841  ;;  %v1637_v58 = vadd.f32 %v4152_v25, %v1614_v21  ;;  %v1593_v45 = vmul.f32 %v2840_v32, %v1545_v33 }
 0x550   : > { %v1636_v26 = vadd.f32 %v4152_v25, %v1613_v16  ;;  %v1592_v63 = vmul.f32 %v2842_v56, %v1544_v22 }
 0x551   : > { %v1653_v30 = vmax.f32 %v1637_v58, 0.0  ;;  %v1616_v19 = vmul.f32 %v4131_v1, %v1593_v45 }
 0x552   : > { %v1652_v62 = vmax.f32 %v1636_v26, 0.0  ;;  %v1615_v18 = vmul.f32 %v4131_v1, %v1592_v63  ;;  %1675 = sbr.rel (%p2092_p9) target bundleno = 1606 (0x646), region = 112  ;;  %v2497_v1 = vpack.c.bf16 (!%p2092_p9), %v1643_v52, %v1642_v2  ;;  %v1677_v52 = vld [vmem:[%s4551_s26] sm:$0xff] (!%p2092_p9)  ;;  %v1676_v2 = vld [vmem:[#allocation5] sm:$0xff] (!%p2092_p9) }
 0x553   : > { %1669 = vst [vmem:[%s3919_s0 + $0x68] sm:$0xff] %v1653_v30  ;;  %v1639_v27 = vadd.f32 %v4152_v25, %v1616_v19 }
 0x554   : > { %1668 = vst [vmem:[%s3919_s0 + $0x60] sm:$0xff] %v1652_v62  ;;  %v1638_v41 = vadd.f32 %v4152_v25, %v1615_v18  ;;  %v3239_v25 = vmov (!%p2092_p9), 0.0   ;;  %2498 = vmatpush3.bf16.msra.mxu0 (!%p2092_p9), %v2497_v1  ;;  %v2512_v38 = vpack.c.bf16 (!%p2092_p9), %v1653_v30, %v1652_v62 }
 0x555   : > { %v1655_v43 = vmax.f32 %v1639_v27, 0.0  ;;  %2391 = vmatprep.mubr.msk.f32.mxu0 (!%p2092_p9), %vm3238_vm0, %v3239_v25  ;;  %2499 = vmatprep.subr.bf16.mxu0 (!%p2092_p9), %v3237_v59 }
 0x556   : > { %v1654_v35 = vmax.f32 %v1638_v41, 0.0 }
 0x557   : > { %1671 = vst [vmem:[%s3919_s0 + $0x78] sm:$0xff] %v1655_v43 }
 0x558   : > { %1670 = vst [vmem:[%s3919_s0 + $0x70] sm:$0xff] %v1654_v35  ;;  %2501 = vmatpush3.bf16.msra.mxu0 (!%p2092_p9), %v2500_v14  ;;  %v2515_v28 = vpack.c.bf16 (!%p2092_p9), %v1655_v43, %v1654_v35 }
 0x559   : > { %2502 = vmatprep.subr.bf16.mxu0 %v3237_v59 }
 0x55c   : > { %2504 = vmatpush3.bf16.msra.mxu0 %v2503_v39 }
 0x55d   : > { %2505 = vmatprep.subr.bf16.mxu0 %v3237_v59 }
 0x560   : > { %2507 = vmatpush3.bf16.msra.mxu0 %v2506_v0 }
 0x561   : > { %2508 = vmatprep.subr.bf16.mxu0 %v3237_v59 }
 0x564   : > { %2510 = vmatpush3.bf16.msra.mxu0 %v2509_v55 }
 0x565   : > { %2511 = vmatprep.subr.bf16.mxu0 %v3237_v59 }
 0x568   : > { %2513 = vmatpush3.bf16.msra.mxu0 %v2512_v38 }
 0x569   : > { %2514 = vmatprep.subr.bf16.mxu0 %v3237_v59 }
 0x56c   : > { %2516 = vmatpush3.bf16.msra.mxu0 %v2515_v28 }
 0x56f   : > { %2392 = vmatmul.mubr.f32.vlgmr.msra.gmra.mrb[0].mxu0 %v1677_v52 }
 0x642   : > { %v1744_v54 = vpop.f32.mrb[0].mxu0 }
 0x643   : > { %v1748_v48 = vadd.f32 %v1744_v54, %v1676_v2  ;;  %v2393_v61 = vpop.f32.mrb[1].mxu0 }
 0x645   : > { %1749 = vst [vmem:[#allocation5] sm:$0xff] %v1748_v48 }
 0x646 PF: > { %s4552_s8 = sld [smem:[#allocation31_spill]] }
 0x64c   : > { %p1750_p10 = scmp.eq.s32.totalorder %s4552_s8, 1 }
 0x64e   : > { %p1751_p3 = pnand %p1750_p10, %p1672_p7 }
 0x64f   : > { %v1756_v9 = vld [vmem:[#allocation15] sm:$0xff] (!%p1751_p3)  ;;  %v1757_v44 = vld [vmem:[#allocation15 + $0x8] sm:$0xff] (!%p1751_p3)  ;;  %v1758_v3 = vld [vmem:[#allocation15 + $0x10] sm:$0xff] (!%p1751_p3)  ;;  %v3240_v8 = vmov (!%p1751_p3), 0.0|0.0   ;;  %vm3241_vm1 = vmmov (!%p1751_p3), 0   ;;  %v3242_v47 = vmov (!%p1751_p3), 0.0  }
 0x650   : > { %1754 = sbr.rel (%p1751_p3) target bundleno = 1864 (0x748), region = 116  ;;  %2517 = vmatprep.subr.bf16.mxu0 (!%p1751_p3), %v3240_v8  ;;  %v2518_v20 = vpack.c.bf16 (!%p1751_p3), %v1757_v44, %v1756_v9  ;;  %v1759_v5 = vld [vmem:[#allocation15 + $0x18] sm:$0xff] (!%p1751_p3)  ;;  %2426 = vmatprep.mubr.msk.f32.mxu0 (!%p1751_p3), %vm3241_vm1, %v3242_v47  ;;  %v1760_v57 = vld [vmem:[#allocation15 + $0x20] sm:$0xff] (!%p1751_p3)  ;;  %v1761_v37 = vld [vmem:[#allocation15 + $0x28] sm:$0xff] (!%p1751_p3)  ;;  %s4554_s9 = sld [smem:[#allocation51_spill]] (!%p1751_p3) }
 0x651   : > { %v2521_v34 = vpack.c.bf16 (!%p1751_p3), %v1759_v5, %v1758_v3  ;;  %v2524_v46 = vpack.c.bf16 (!%p1751_p3), %v1761_v37, %v1760_v57  ;;  %v1762_v6 = vld [vmem:[#allocation15 + $0x30] sm:$0xff] (!%p1751_p3)  ;;  %v1763_v11 = vld [vmem:[#allocation15 + $0x38] sm:$0xff] (!%p1751_p3)  ;;  %v1764_v36 = vld [vmem:[#allocation15 + $0x40] sm:$0xff] (!%p1751_p3) }
 0x652   : > { %2519 = vmatpush3.bf16.msra.mxu0 (!%p1751_p3), %v2518_v20  ;;  %v2527_v12 = vpack.c.bf16 (!%p1751_p3), %v1763_v11, %v1762_v6  ;;  %v1765_v13 = vld [vmem:[#allocation15 + $0x48] sm:$0xff] (!%p1751_p3)  ;;  %v1766_v7 = vld [vmem:[#allocation15 + $0x50] sm:$0xff] (!%p1751_p3)  ;;  %v1767_v10 = vld [vmem:[#allocation15 + $0x58] sm:$0xff] (!%p1751_p3) }
 0x653   : > { %2520 = vmatprep.subr.bf16.mxu0 (!%p1751_p3), %v3240_v8  ;;  %v2530_v51 = vpack.c.bf16 (!%p1751_p3), %v1765_v13, %v1764_v36  ;;  %v2533_v42 = vpack.c.bf16 (!%p1751_p3), %v1767_v10, %v1766_v7  ;;  %v1768_v31 = vld [vmem:[#allocation15 + $0x60] sm:$0xff] (!%p1751_p3)  ;;  %v1769_v40 = vld [vmem:[#allocation15 + $0x68] sm:$0xff] (!%p1751_p3)  ;;  %v1770_v53 = vld [vmem:[#allocation15 + $0x70] sm:$0xff] (!%p1751_p3) }
 0x654   : > { %v2536_v4 = vpack.c.bf16 (!%p1751_p3), %v1769_v40, %v1768_v31  ;;  %v1771_v23 = vld [vmem:[#allocation15 + $0x78] sm:$0xff] (!%p1751_p3)  ;;  %v1755_v24 = vld [vmem:[#allocation5] sm:$0xff] (!%p1751_p3) }
 0x655   : > { %v2539_v17 = vpack.c.bf16 (!%p1751_p3), %v1771_v23, %v1770_v53 }
 0x656   : > { %2522 = vmatpush3.bf16.msra.mxu0 (!%p1751_p3), %v2521_v34  ;;  %v2093_v60 = vld [vmem:[%s4554_s9] ss:$0 sm:$0xff] (!%p1751_p3) }
 0x657   : > { %2523 = vmatprep.subr.bf16.mxu0 %v3240_v8 }
 0x65a   : > { %2525 = vmatpush3.bf16.msra.mxu0 %v2524_v46 }
 0x65b   : > { %2526 = vmatprep.subr.bf16.mxu0 %v3240_v8 }
 0x65e   : > { %2528 = vmatpush3.bf16.msra.mxu0 %v2527_v12 }
 0x65f   : > { %2529 = vmatprep.subr.bf16.mxu0 %v3240_v8 }
 0x662   : > { %2531 = vmatpush3.bf16.msra.mxu0 %v2530_v51 }
 0x663   : > { %2532 = vmatprep.subr.bf16.mxu0 %v3240_v8 }
 0x666   : > { %2534 = vmatpush3.bf16.msra.mxu0 %v2533_v42 }
 0x667   : > { %2535 = vmatprep.subr.bf16.mxu0 %v3240_v8 }
 0x66a   : > { %2537 = vmatpush3.bf16.msra.mxu0 %v2536_v4 }
 0x66b   : > { %2538 = vmatprep.subr.bf16.mxu0 %v3240_v8 }
 0x66e   : > { %2540 = vmatpush3.bf16.msra.mxu0 %v2539_v17 }
 0x671   : > { %2427 = vmatmul.mubr.f32.vlgmr.msra.gmra.mrb[0].mxu0 %v1755_v24 }
 0x744   : > { %v1845_v49 = vpop.f32.mrb[0].mxu0 }
 0x745   : > { %v1846_v50 = vadd.f32 %v2093_v60, %v1845_v49  ;;  %v2428_v15 = vpop.f32.mrb[1].mxu0 }
 0x747   : > { %1849 = vst [vmem:[#allocation16] sm:$0xff] %v1846_v50 }
 0x748 PF: > { %p2634_p5 = scmp.eq.s32.totalorder %s3400_s11, 11  ;;  %s3243_s6 = smov [#allocation16]  }
 0x749   : > { %s1857_s7 = sshll.u32 %s3243_s6, 4  ;;  %s1858_s7 = int_to_ptr.vmem [resolvable:$true] %s1857_s7 }
 0x74a   : > { %s3019_s30 = scalar_lea.vmem %s1858_s7, 128  ;;  %p3026_p13 = scmp.lt.s32.totalorder %s1858_s7, %s1858_s7 }
 0x74b   : > { %p3020_p1 = scmp.ne.s32.totalorder %s1858_s7, %s3019_s30  ;;  %p3027_p11 = scmp.lt.s32.totalorder %s3019_s30, %s3019_s30 }
 0x74d   : > { %p3021_p2 = pnand %p3020_p1, %p2634_p5  ;;  %p3028_p12 = por %p3027_p11, %p3026_p13 }
 0x74f   : > { %p3022_p6 = pneg %p3021_p2 }
 0x751   : > { %p3029_p0 = pnand %p3028_p12, %p3022_p6 }
 0x753   : > { %3032 = shalt.err (!%p3029_p0)
}
 0x754   : > { %s4555_s20 = sld [smem:[#allocation52_spill]] }
 0x75a   : > { %s4556_s0 = smov %s4555_s20  ;;  %s3033_s27 = scalar_lea.hbm %s4555_s20, 128 }
 0x75b   : > { %p3034_p4 = scmp.ne.s32.totalorder %s4556_s0, %s3033_s27  ;;  %p3039_p9 = scmp.lt.u32.totalorder %s3033_s27, %s4556_s0 }
 0x75d   : > { %p3035_p8 = pnand %p3034_p4, %p2634_p5 }
 0x75f   : > { %p3036_p7 = pneg %p3035_p8 }
 0x761   : > { %p3041_p10 = pnand %p3039_p9, %p3036_p7 }
 0x763   : > { %3044 = shalt.err (!%p3041_p10)
}
 0x764   : > { %2606 = dma.vmem_to_hbm [thread:$0]  (%p2634_p5), %s1858_s7, 128, %s4556_s0, [#allocation8]  }
 0x765   : > { %3146 = dma.done.wait (%p2634_p5), [#allocation8], 128  }
 0x766   : > { %3148 = vsyncadd (%p2634_p5), [#allocation8], 4294967168 }
 0x767 PF: > { %s29_s16 = sadd.s32 1, %s3223_s16   ;;  %s4558_s17 = sld [smem:[#allocation25_spill]] }
 0x768   : > { %p4341_p3 = scmp.ge.s32.totalorder %s29_s16, 14   ;;  %s4559_s8 = sld [smem:[#allocation26_spill]] }
 0x769   : > { %s4560_s19 = smov %s3695_s18  ;;  %s4561_s20 = sld [smem:[#allocation28_spill]] }
 0x76a   : > { %s4562_s12 = sld [smem:[#allocation29_spill]]  ;;  %s4563_s11 = sld [smem:[#allocation40_spill]] }
 0x76b   : > { %s4564_s29 = sld [smem:[#allocation33_spill]]  ;;  %s4565_s5 = sld [smem:[#allocation34_spill]] }
 0x76c   : > { %s4566_s13 = sld [smem:[#allocation36_spill]]  ;;  %s4567_s9 = sld [smem:[#allocation37_spill]] }
 0x76d   : > { %s4569_s15 = sld [smem:[#allocation38_spill]]  ;;  %s4571_s21 = smov %s3171_s22 }
 0x76e   : > { %s4568_s18 = smov %s4559_s8  ;;  %s4572_s22 = smov %s3642_s23 }
 0x76f   : > { %s4573_s23 = smov %s3179_s24  ;;  %s4574_s24 = smov %s3183_s25 }
 0x770   : > { %s4575_s25 = smov %s3555_s4  ;;  %s4576_s26 = smov %s4562_s12 }
 0x771   : > { %s4577_s27 = smov %s3195_s28  ;;  %s4578_s28 = smov %s4563_s11 }
 0x772   : > { %s4579_s30 = smov %s3215_s14  ;;  %s4580_s12 = smov %s4565_s5 }
 0x773   : > { %s4581_s14 = smov %s4567_s9  ;;  %28 = sbr.rel (!%p4341_p3) target bundleno = 28 (0x1c), region = 186 }
 0x77a   :  { %1870 = vsyncpa [#allocation7], 1 }
 0x77b   :  { %1872 = vsyncpa [#allocation7 + $0x1], 1 }
 0x77c   :  { %1873 = vsyncpa [#allocation10], 1 }
 0x77d   :  { %1875 = vsyncpa [#allocation10 + $0x1], 1 }
 0x77e   :  { %1876 = vsyncpa [#allocation13], 1 }
 0x77f   :  { %1877 = vsyncpa [#allocation8], 1 }
 0x780   :  { %1879 = vsyncpa [#allocation8 + $0x1], 1 }

</bundles_post_ra>
